<compile_context>
chip_gen: v7x
topology: tpu7x:2x2x1
jax: 0.10.0
libtpu: 0.0.40
codegen_flags: <defaults>
</compile_context>

<pallas_src>
import functools

import jax
import jax.numpy as jnp
from jax import lax
from jax.experimental import pallas as pl
from jax.experimental.pallas import tpu as pltpu

LANE = 128      # pad every channel dim to a multiple of the 128-lane width
_COL0 = 8       # 8-aligned (sublane) column offset of real data inside the slab


def _round_up(n, m):
    return ((n + m - 1) // m) * m


# ---------------------------------------------------------------------------
# Fused InvertedResidual kernel (one batch image x TH output rows per step)
# ---------------------------------------------------------------------------

def _inverted_residual_kernel(x_ref, *refs, H, W, Wo, TH, TWO, stride,
                              has_expand, use_shortcut):
    """Refs (in order):
      x_ref   : (1, H, W, Cin_p)   full image, VMEM-resident per batch index
      w_exp   : (Cin_p, Ch_p) bf16 [only if has_expand] scale-folded 1x1 weight
      b_exp   : (1, Ch_p)     f32
      w_dw    : (3, 3, Ch_p)  f32  scale-folded depthwise weight
      b_dw    : (1, 1, Ch_p)  f32
      w_pw    : (Ch_p, Cout_p) bf16 scale-folded projection weight
      b_pw    : (1, Cout_p)   f32
      o_ref   : (1, TH, Wo, Cout_p)
      hid_ref : (RIN, WPAD, Ch_p) f32 VMEM scratch (hidden activation slab)
    """
    if has_expand:
        w_exp_ref, b_exp_ref = refs[0], refs[1]
        refs = refs[2:]
    w_dw_ref, b_dw_ref, w_pw_ref, b_pw_ref, o_ref, hid_ref = refs

    s = stride
    rin = (TH - 1) * s + 3            # input rows needed incl. 3x3 halo
    ch_p = hid_ref.shape[-1]
    cin_p = x_ref.shape[-1]
    cout_p = o_ref.shape[-1]

    rb = pl.program_id(1)
    base = rb * (TH * s) - 1          # un-padded input row feeding slab row 0

    # ---- Stage 1: expand 1x1 conv + BN + ReLU6, straight into the slab ------
    def _expand(rows):                # (R, W, cin_p) -> (R, W, ch_p) f32
        r = rows.shape[0]
        if has_expand:
            h = jnp.dot(rows.astype(jnp.bfloat16).reshape(r * W, cin_p),
                        w_exp_ref[...],                       # bf16 weights
                        preferred_element_type=jnp.float32)   # f32 accumulate
            h = jnp.clip(h + b_exp_ref[...], 0.0, 6.0)
            return h.reshape(r, W, ch_p)
        return rows.astype(jnp.float32)                       # ch_p == cin_p

    # interior rows (always inside the image) - one big matmul, no concatenate
    mid_start = pl.multiple_of(rb * (TH * s), TH * s)
    mid = x_ref[0, pl.ds(mid_start, rin - 2), :, :]
    hid_ref[1:rin - 1, _COL0:_COL0 + W, :] = _expand(mid)

    # top halo row: compute if inside the image, zero otherwise
    @pl.when(base >= 0)
    def _():
        hid_ref[0:1, _COL0:_COL0 + W, :] = _expand(
            x_ref[0, pl.ds(base, 1), :, :])

    @pl.when(base < 0)
    def _():
        hid_ref[0:1, _COL0:_COL0 + W, :] = jnp.zeros((1, W, ch_p), jnp.float32)

    bot = base + rin - 1              # bottom halo row index in the image

    @pl.when(bot < H)
    def _():
        hid_ref[rin - 1:rin, _COL0:_COL0 + W, :] = _expand(
            x_ref[0, pl.ds(bot, 1), :, :])

    @pl.when(bot >= H)
    def _():
        hid_ref[rin - 1:rin, _COL0:_COL0 + W, :] = jnp.zeros((1, W, ch_p),
                                                             jnp.float32)

    # Zero ONLY the two halo columns the 3x3 taps read.  The scratch persists
    # across grid steps and per-core, so this must run every step.
    zcol = jnp.zeros((rin, 1, ch_p), jnp.float32)
    hid_ref[:, _COL0 - 1:_COL0, :] = zcol
    hid_ref[:, _COL0 + W:_COL0 + W + 1, :] = zcol

    # ---- Stage 2+3: depthwise 3x3 + BN + ReLU6, project 1x1 + BN (+res) -----
    w_dw = w_dw_ref[...]              # hoisted once (3,3,ch_p)
    b_dw = b_dw_ref[...]
    b_pw = b_pw_ref[...]

    for t in range(Wo // TWO):        # static output-column tiling (vreg budget)
        oc0 = t * TWO
        acc = jnp.zeros((TH, TWO, ch_p), jnp.float32)
        for di in range(3):
            for dj in range(3):
                c0 = _COL0 - 1 + dj + s * oc0
                if s == 1:
                    # tap window sliced directly from the slab ref
                    win = hid_ref[di:di + TH, c0:c0 + TWO, :]
                else:
                    # TODO(synk): one-time even/odd column deinterleave instead
                    band = hid_ref[di:di + s * (TH - 1) + 1,
                                   c0:c0 + s * (TWO - 1) + 1, :]
                    win = lax.slice(band, (0, 0, 0), band.shape, (s, s, 1))
                acc = acc + win * w_dw[di, dj:dj + 1, :]
        acc = jnp.clip(acc + b_dw, 0.0, 6.0)

        y = jnp.dot(acc.astype(jnp.bfloat16).reshape(TH * TWO, ch_p),
                    w_pw_ref[...],                        # bf16 weights
                    preferred_element_type=jnp.float32)   # f32 accumulate
        y = (y + b_pw).reshape(TH, TWO, cout_p)
        if use_shortcut:
            # relies on padded channels of x / w_pw columns / b_pw being zero
            row0 = pl.multiple_of(rb * TH, TH)
            y = y + x_ref[0, pl.ds(row0, TH), oc0:oc0 + TWO, :].astype(
                jnp.float32)
        o_ref[0, :, oc0:oc0 + TWO, :] = y.astype(o_ref.dtype)


# ---------------------------------------------------------------------------
# Wrapper: layout + padding plumbing around one fused pallas_call
# ---------------------------------------------------------------------------

def _vmem_limit_bytes():
    # generation-dependent limit (v5e/v6e: 128 MiB physical -> 96 MiB,
    # v7x: 64 MiB -> 48 MiB); robust fallback if the query is unavailable.
    try:
        cap = int(pltpu.get_tpu_info().vmem_capacity_bytes)
    except Exception:
        cap = 64 * 1024 * 1024
    return max(32 * 1024 * 1024, (cap * 3) // 4)


def _pick_row_block(h_out, stride, wpad, w_out, ch_p, cout_p, budget_bytes,
                    max_rows=32):
    best = 1
    for th in range(1, min(max_rows, h_out) + 1):
        if h_out % th:
            continue
        rin = (th - 1) * stride + 3
        per_step = rin * wpad * ch_p * 4 + 2 * th * w_out * cout_p * 4
        if per_step <= budget_bytes:
            best = th
    return best


def _pick_col_block(w_out, th, ch_p, budget_bytes=128 * 1024):
    best = 1
    for two in range(1, w_out + 1):
        if w_out % two == 0 and th * two * ch_p * 4 <= budget_bytes:
            best = two
    return best


def inverted_residual_forward(x_nchw, kp, *, out_ch, stride, expand_ratio,
                              max_block_rows=32):
    N, in_ch, H, W = x_nchw.shape
    has_expand = expand_ratio != 1
    use_shortcut = (stride == 1) and (in_ch == out_ch)

    cin_p = _round_up(in_ch, LANE)
    ch_p = kp["w_dw"].shape[-1]
    cout_p = kp["w_pw"].shape[-1]

    # NCHW -> NHWC + lane padding of the channel dim (one fused XLA relayout).
    x = jnp.transpose(x_nchw, (0, 2, 3, 1))
    if cin_p != in_ch:
        x = jnp.pad(x, ((0, 0), (0, 0), (0, 0), (0, cin_p - in_ch)))

    Ho = (H + 2 - 3) // stride + 1
    Wo = (W + 2 - 3) // stride + 1
    WPAD = _round_up(_COL0 + W + 1, 8)     # minimal 8-aligned slab width

    vmem_limit = _vmem_limit_bytes()
    weight_bytes = sum(int(a.size) * a.dtype.itemsize for a in kp.values())
    fixed = 2 * H * W * cin_p * 4 + 2 * weight_bytes   # input dbl-buf + weights
    budget = max(vmem_limit - fixed, vmem_limit // 4) // 2
    TH = _pick_row_block(Ho, stride, WPAD, Wo, ch_p, cout_p, budget,
                         max_block_rows)
    TWO = _pick_col_block(Wo, TH, ch_p)
    RIN = (TH - 1) * stride + 3

    kernel = functools.partial(
        _inverted_residual_kernel, H=H, W=W, Wo=Wo, TH=TH, TWO=TWO,
        stride=stride, has_expand=has_expand, use_shortcut=use_shortcut)

    args = [x]
    # TODO(synk): for very large H*W, stream the input as overlapping row slabs
    # (manual make_async_copy) instead of a full-image resident block (v7x).
    in_specs = [pl.BlockSpec((1, H, W, cin_p), lambda n, rb: (n, 0, 0, 0))]
    if has_expand:
        args += [kp["w_exp"], kp["b_exp"]]
        in_specs += [
            pl.BlockSpec(kp["w_exp"].shape, lambda n, rb: (0, 0)),
            pl.BlockSpec(kp["b_exp"].shape, lambda n, rb: (0, 0)),
        ]
    args += [kp["w_dw"], kp["b_dw"], kp["w_pw"], kp["b_pw"]]
    in_specs += [
        pl.BlockSpec(kp["w_dw"].shape, lambda n, rb: (0, 0, 0)),
        pl.BlockSpec(kp["b_dw"].shape, lambda n, rb: (0, 0, 0)),
        pl.BlockSpec(kp["w_pw"].shape, lambda n, rb: (0, 0)),
        pl.BlockSpec(kp["b_pw"].shape, lambda n, rb: (0, 0)),
    ]

    flops = 2 * N * Ho * Wo * ch_p * (9 + cout_p)
    if has_expand:
        flops += 2 * N * H * W * cin_p * ch_p
    bytes_accessed = (int(x.size) * x.dtype.itemsize
                      + N * Ho * Wo * cout_p * 4
                      + sum(int(a.size) * a.dtype.itemsize for a in args[1:]))

    out_p = pl.pallas_call(
        kernel,
        out_shape=jax.ShapeDtypeStruct((N, Ho, Wo, cout_p), x.dtype),
        grid=(N, Ho // TH),
        in_specs=in_specs,
        out_specs=pl.BlockSpec((1, TH, Wo, cout_p), lambda n, rb: (n, rb, 0, 0)),
        scratch_shapes=[pltpu.VMEM((RIN, WPAD, ch_p), jnp.float32)],
        compiler_params=pltpu.CompilerParams(
            dimension_semantics=("parallel", "parallel"),
            vmem_limit_bytes=vmem_limit),
        cost_estimate=pl.CostEstimate(flops=flops, transcendentals=0,
                                      bytes_accessed=bytes_accessed),
    )(*args)

    out = out_p[..., :out_ch]                     # drop lane padding
    return jnp.transpose(out, (0, 3, 1, 2))       # NHWC -> NCHW


# ---------------------------------------------------------------------------
# Parameter construction (BN folded + scale fused into weights + lane padding)
# NOTE: residual correctness relies on the lane-padded channels of x, the
# padded columns of w_pw and padded entries of b_pw being exactly zero.
# ---------------------------------------------------------------------------

def _fold_bn(gamma, beta, mean, var, eps=1e-5):
    s = gamma / jnp.sqrt(var + eps)
    return s, beta - mean * s


def make_params(key, in_ch, out_ch, expand_ratio):
    hidden = in_ch * expand_ratio
    ks = jax.random.split(key, 15)
    raw = {
        "conv_exp": jax.random.normal(ks[0], (hidden, in_ch, 1, 1)) * 0.2,
        "g_exp": jax.random.uniform(ks[1], (hidden,), minval=0.5, maxval=1.5),
        "be_exp": jax.random.normal(ks[2], (hidden,)) * 0.1,
        "m_exp": jax.random.normal(ks[3], (hidden,)) * 0.1,
        "v_exp": jax.random.uniform(ks[4], (hidden,), minval=0.5, maxval=1.5),
        "conv_dw": jax.random.normal(ks[5], (hidden, 1, 3, 3)) * 0.2,
        "g_dw": jax.random.uniform(ks[6], (hidden,), minval=0.5, maxval=1.5),
        "be_dw": jax.random.normal(ks[7], (hidden,)) * 0.1,
        "m_dw": jax.random.normal(ks[8], (hidden,)) * 0.1,
        "v_dw": jax.random.uniform(ks[9], (hidden,), minval=0.5, maxval=1.5),
        "conv_pw": jax.random.normal(ks[10], (out_ch, hidden, 1, 1)) * 0.2,
        "g_pw": jax.random.uniform(ks[11], (out_ch,), minval=0.5, maxval=1.5),
        "be_pw": jax.random.normal(ks[12], (out_ch,)) * 0.1,
        "m_pw": jax.random.normal(ks[13], (out_ch,)) * 0.1,
        "v_pw": jax.random.uniform(ks[14], (out_ch,), minval=0.5, maxval=1.5),
    }
    s_exp, b_exp = _fold_bn(raw["g_exp"], raw["be_exp"], raw["m_exp"], raw["v_exp"])
    s_dw, b_dw = _fold_bn(raw["g_dw"], raw["be_dw"], raw["m_dw"], raw["v_dw"])
    s_pw, b_pw = _fold_bn(raw["g_pw"], raw["be_pw"], raw["m_pw"], raw["v_pw"])

    cin_p = _round_up(in_ch, LANE)
    ch_p = _round_up(hidden, LANE)
    cout_p = _round_up(out_ch, LANE)

    def pad2(a, r, c):
        return jnp.pad(a, ((0, r - a.shape[0]), (0, c - a.shape[1])))

    w_exp = raw["conv_exp"][:, :, 0, 0].T * s_exp[None, :]                 # (in, hid)
    w_dw = jnp.transpose(raw["conv_dw"][:, 0], (1, 2, 0)) * s_dw[None, None, :]  # (3,3,hid)
    w_pw = raw["conv_pw"][:, :, 0, 0].T * s_pw[None, :]                    # (hid, out)

    kp = {
        # 1x1 conv weights stored bf16 for the MXU; biases / depthwise stay f32
        "w_exp": pad2(w_exp, cin_p, ch_p).astype(jnp.bfloat16),
        "b_exp": jnp.pad(b_exp, (0, ch_p - hidden)).reshape(1, ch_p),
        "w_dw": jnp.pad(w_dw, ((0, 0), (0, 0), (0, ch_p - hidden))),
        "b_dw": jnp.pad(b_dw, (0, ch_p - hidden)).reshape(1, 1, ch_p),
        "w_pw": pad2(w_pw, ch_p, cout_p).astype(jnp.bfloat16),
        "b_pw": jnp.pad(b_pw, (0, cout_p - out_ch)).reshape(1, cout_p),
    }
    return raw, kp


# ---------------------------------------------------------------------------
# Pure-JAX NCHW reference (matches the PyTorch module, BN in eval mode)
# ---------------------------------------------------------------------------

def ref_forward(x, raw, *, stride, expand_ratio):
    def bn(y, g, b, m, v, eps=1e-5):
        inv = (g / jnp.sqrt(v + eps))[None, :, None, None]
        return (y - m[None, :, None, None]) * inv + b[None, :, None, None]

    dn = ("NCHW", "OIHW", "NCHW")
    in_ch = x.shape[1]
    out_ch = raw["conv_pw"].shape[0]
    use_shortcut = (stride == 1) and (in_ch == out_ch)

    h = x
    if expand_ratio != 1:
        h = lax.conv_general_dilated(h, raw["conv_exp"], (1, 1), "VALID",
                                     dimension_numbers=dn)
        h = jnp.clip(bn(h, raw["g_exp"], raw["be_exp"], raw["m_exp"], raw["v_exp"]), 0, 6)
    h = lax.conv_general_dilated(h, raw["conv_dw"], (stride, stride),
                                 ((1, 1), (1, 1)), dimension_numbers=dn,
                                 feature_group_count=h.shape[1])
    h = jnp.clip(bn(h, raw["g_dw"], raw["be_dw"], raw["m_dw"], raw["v_dw"]), 0, 6)
    h = lax.conv_general_dilated(h, raw["conv_pw"], (1, 1), "VALID",
                                 dimension_numbers=dn)
    h = bn(h, raw["g_pw"], raw["be_pw"], raw["m_pw"], raw["v_pw"])
    return x + h if use_shortcut else h


# ---------------------------------------------------------------------------

if __name__ == "__main__":
    # MobileNetV2-style block: in=out=16, stride=1, expand_ratio=6 -> hidden=96,
    # residual shortcut active.  16x16 spatial, batch 2.
    batch, in_ch, out_ch, hw = 2, 16, 16, 16
    stride, expand_ratio = 1, 6

    key = jax.random.PRNGKey(0)
    kx, kparam = jax.random.split(key)
    x = jax.random.normal(kx, (batch, in_ch, hw, hw), jnp.float32)

    raw, kp = make_params(kparam, in_ch, out_ch, expand_ratio)

    fwd = jax.jit(functools.partial(inverted_residual_forward, out_ch=out_ch,
                                    stride=stride, expand_ratio=expand_ratio))
    out = jax.block_until_ready(fwd(x, kp))

    ref = jax.block_until_ready(
        ref_forward(x, raw, stride=stride, expand_ratio=expand_ratio))

    assert out.shape == ref.shape, (out.shape, ref.shape)
    # bf16 MXU operands (f32 accumulation) vs the all-f32 reference: use a
    # bf16-appropriate tolerance; real algorithmic bugs produce O(0.1-1) errors
    # and are still caught.
    max_err = float(jnp.max(jnp.abs(out - ref)))
    assert jnp.allclose(out, ref, atol=3e-2, rtol=3e-2), max_err

    print("KERNEL_OK")
</pallas_src>

<mosaic_0001>
module attributes {stable_mosaic.version = 11 : i64} {
  func.func @_inverted_residual_kernel(%arg0: i32, %arg1: i32, %arg2: memref<1x16x16x128xf32, #tpu.memory_space<vmem>>, %arg3: memref<128x128xbf16, #tpu.memory_space<vmem>>, %arg4: memref<1x128xf32, #tpu.memory_space<vmem>>, %arg5: memref<3x3x128xf32, #tpu.memory_space<vmem>>, %arg6: memref<1x1x128xf32, #tpu.memory_space<vmem>>, %arg7: memref<128x128xbf16, #tpu.memory_space<vmem>>, %arg8: memref<1x128xf32, #tpu.memory_space<vmem>>, %arg9: memref<1x16x16x128xf32, #tpu.memory_space<vmem>>, %arg10: memref<18x32x128xf32, #tpu.memory_space<vmem>>) attributes {dimension_semantics = [#tpu.dimension_semantics<parallel>, #tpu.dimension_semantics<parallel>], iteration_bounds = array<i64: 2, 1>, scalar_prefetch = 0 : i64, scratch_operands = 1 : i64, tpu.core_type = #tpu.core_type<tc>, window_params = [{transform_indices = @transform_0, window_bounds = array<i64: 1, 16, 16, 128>}, {pipeline_mode = #tpu.pipeline_mode<synchronous>, transform_indices = @transform_1, window_bounds = array<i64: 128, 128>}, {pipeline_mode = #tpu.pipeline_mode<synchronous>, transform_indices = @transform_2, window_bounds = array<i64: 1, 128>}, {pipeline_mode = #tpu.pipeline_mode<synchronous>, transform_indices = @transform_3, window_bounds = array<i64: 3, 3, 128>}, {pipeline_mode = #tpu.pipeline_mode<synchronous>, transform_indices = @transform_4, window_bounds = array<i64: 1, 1, 128>}, {pipeline_mode = #tpu.pipeline_mode<synchronous>, transform_indices = @transform_5, window_bounds = array<i64: 128, 128>}, {pipeline_mode = #tpu.pipeline_mode<synchronous>, transform_indices = @transform_6, window_bounds = array<i64: 1, 128>}, {transform_indices = @transform_7, window_bounds = array<i64: 1, 16, 16, 128>}]} {
    %c16_i32 = arith.constant 16 : i32
    %0 = arith.muli %arg1, %c16_i32 : i32
    %c1_i32 = arith.constant 1 : i32
    %1 = arith.subi %0, %c1_i32 : i32
    %c16_i32_0 = arith.constant 16 : i32
    %2 = arith.muli %arg1, %c16_i32_0 : i32
    %3 = tpu.assume_multiple %2, 16 : i32
    %c0 = arith.constant 0 : index
    %4 = arith.index_cast %3 : i32 to index
    %c0_1 = arith.constant 0 : index
    %c0_2 = arith.constant 0 : index
    %5 = vector.load %arg2[%c0, %4, %c0_1, %c0_2] : memref<1x16x16x128xf32, #tpu.memory_space<vmem>>, vector<1x16x16x128xf32>
    %6 = vector.shape_cast %5 : vector<1x16x16x128xf32> to vector<16x16x128xf32>
    %7 = arith.truncf %6 : vector<16x16x128xf32> to vector<16x16x128xbf16>
    %8 = vector.shape_cast %7 : vector<16x16x128xbf16> to vector<256x128xbf16>
    %c0_3 = arith.constant 0 : index
    %c0_4 = arith.constant 0 : index
    %9 = vector.load %arg3[%c0_3, %c0_4] : memref<128x128xbf16, #tpu.memory_space<vmem>>, vector<128x128xbf16>
    %cst = arith.constant dense<0.000000e+00> : vector<256x128xf32>
    %10 = tpu.matmul %8, %9, %cst {dimension_numbers = #tpu.dot_dimension_numbers<[1], [0], [0], [1], [0, 0, 1, 1], [], []>} : vector<256x128xbf16>, vector<128x128xbf16>, vector<256x128xf32> -> vector<256x128xf32>
    %c0_5 = arith.constant 0 : index
    %c0_6 = arith.constant 0 : index
    %11 = vector.load %arg4[%c0_5, %c0_6] : memref<1x128xf32, #tpu.memory_space<vmem>>, vector<1x128xf32>
    %12 = vector.broadcast %11 : vector<1x128xf32> to vector<256x128xf32>
    %13 = arith.addf %10, %12 : vector<256x128xf32>
    %cst_7 = arith.constant 0.000000e+00 : f32
    %cst_8 = arith.constant 6.000000e+00 : f32
    %14 = vector.broadcast %cst_7 : f32 to vector<256x128xf32>
    %15 = arith.maximumf %14, %13 : vector<256x128xf32>
    %16 = vector.broadcast %cst_8 : f32 to vector<256x128xf32>
    %17 = arith.minimumf %16, %15 : vector<256x128xf32>
    %18 = vector.shape_cast %17 : vector<256x128xf32> to vector<16x16x128xf32>
    %c1 = arith.constant 1 : index
    %c8 = arith.constant 8 : index
    %c0_9 = arith.constant 0 : index
    %19 = vector.load %arg10[%c1, %c8, %c0_9] : memref<18x32x128xf32, #tpu.memory_space<vmem>>, vector<16x16x128xf32>
    tpu.vector_store %arg10[%c1, %c8, %c0_9], %18 {strides = array<i32>} : memref<18x32x128xf32, #tpu.memory_space<vmem>>, vector<16x16x128xf32>,
    %c0_i32 = arith.constant 0 : i32
    %20 = arith.cmpi sge, %1, %c0_i32 : i32
    %21 = arith.extui %20 : i1 to i32
    %c0_i32_10 = arith.constant 0 : i32
    %22 = arith.cmpi ne, %21, %c0_i32_10 : i32
    scf.if %22 {
      %c0_70 = arith.constant 0 : index
      %126 = arith.index_cast %1 : i32 to index
      %c0_71 = arith.constant 0 : index
      %c0_72 = arith.constant 0 : index
      %127 = vector.load %arg2[%c0_70, %126, %c0_71, %c0_72] : memref<1x16x16x128xf32, #tpu.memory_space<vmem>>, vector<1x1x16x128xf32>
      %128 = vector.shape_cast %127 : vector<1x1x16x128xf32> to vector<1x16x128xf32>
      %129 = arith.truncf %128 : vector<1x16x128xf32> to vector<1x16x128xbf16>
      %130 = vector.shape_cast %129 : vector<1x16x128xbf16> to vector<16x128xbf16>
      %c0_73 = arith.constant 0 : index
      %c0_74 = arith.constant 0 : index
      %131 = vector.load %arg3[%c0_73, %c0_74] : memref<128x128xbf16, #tpu.memory_space<vmem>>, vector<128x128xbf16>
      %cst_75 = arith.constant dense<0.000000e+00> : vector<16x128xf32>
      %132 = tpu.matmul %130, %131, %cst_75 {dimension_numbers = #tpu.dot_dimension_numbers<[1], [0], [0], [1], [0, 0, 1, 1], [], []>} : vector<16x128xbf16>, vector<128x128xbf16>, vector<16x128xf32> -> vector<16x128xf32>
      %c0_76 = arith.constant 0 : index
      %c0_77 = arith.constant 0 : index
      %133 = vector.load %arg4[%c0_76, %c0_77] : memref<1x128xf32, #tpu.memory_space<vmem>>, vector<1x128xf32>
      %134 = vector.broadcast %133 : vector<1x128xf32> to vector<16x128xf32>
      %135 = arith.addf %132, %134 : vector<16x128xf32>
      %cst_78 = arith.constant 0.000000e+00 : f32
      %cst_79 = arith.constant 6.000000e+00 : f32
      %136 = vector.broadcast %cst_78 : f32 to vector<16x128xf32>
      %137 = arith.maximumf %136, %135 : vector<16x128xf32>
      %138 = vector.broadcast %cst_79 : f32 to vector<16x128xf32>
      %139 = arith.minimumf %138, %137 : vector<16x128xf32>
      %140 = vector.shape_cast %139 : vector<16x128xf32> to vector<1x16x128xf32>
      %c0_80 = arith.constant 0 : index
      %c8_81 = arith.constant 8 : index
      %c0_82 = arith.constant 0 : index
      %141 = vector.load %arg10[%c0_80, %c8_81, %c0_82] : memref<18x32x128xf32, #tpu.memory_space<vmem>>, vector<1x16x128xf32>
      tpu.vector_store %arg10[%c0_80, %c8_81, %c0_82], %140 {strides = array<i32>} : memref<18x32x128xf32, #tpu.memory_space<vmem>>, vector<1x16x128xf32>,
    } else {
    }
    %c0_i32_11 = arith.constant 0 : i32
    %23 = arith.cmpi slt, %1, %c0_i32_11 : i32
    %24 = arith.extui %23 : i1 to i32
    %c0_i32_12 = arith.constant 0 : i32
    %25 = arith.cmpi ne, %24, %c0_i32_12 : i32
    scf.if %25 {
      %cst_70 = arith.constant 0.000000e+00 : f32
      %126 = vector.broadcast %cst_70 : f32 to vector<1x16x128xf32>
      %c0_71 = arith.constant 0 : index
      %c8_72 = arith.constant 8 : index
      %c0_73 = arith.constant 0 : index
      %127 = vector.load %arg10[%c0_71, %c8_72, %c0_73] : memref<18x32x128xf32, #tpu.memory_space<vmem>>, vector<1x16x128xf32>
      tpu.vector_store %arg10[%c0_71, %c8_72, %c0_73], %126 {strides = array<i32>} : memref<18x32x128xf32, #tpu.memory_space<vmem>>, vector<1x16x128xf32>,
    } else {
    }
    %c18_i32 = arith.constant 18 : i32
    %26 = arith.addi %1, %c18_i32 : i32
    %c1_i32_13 = arith.constant 1 : i32
    %27 = arith.subi %26, %c1_i32_13 : i32
    %c16_i32_14 = arith.constant 16 : i32
    %28 = arith.cmpi slt, %27, %c16_i32_14 : i32
    %29 = arith.extui %28 : i1 to i32
    %c0_i32_15 = arith.constant 0 : i32
    %30 = arith.cmpi ne, %29, %c0_i32_15 : i32
    scf.if %30 {
      %c0_70 = arith.constant 0 : index
      %126 = arith.index_cast %27 : i32 to index
      %c0_71 = arith.constant 0 : index
      %c0_72 = arith.constant 0 : index
      %127 = vector.load %arg2[%c0_70, %126, %c0_71, %c0_72] : memref<1x16x16x128xf32, #tpu.memory_space<vmem>>, vector<1x1x16x128xf32>
      %128 = vector.shape_cast %127 : vector<1x1x16x128xf32> to vector<1x16x128xf32>
      %129 = arith.truncf %128 : vector<1x16x128xf32> to vector<1x16x128xbf16>
      %130 = vector.shape_cast %129 : vector<1x16x128xbf16> to vector<16x128xbf16>
      %c0_73 = arith.constant 0 : index
      %c0_74 = arith.constant 0 : index
      %131 = vector.load %arg3[%c0_73, %c0_74] : memref<128x128xbf16, #tpu.memory_space<vmem>>, vector<128x128xbf16>
      %cst_75 = arith.constant dense<0.000000e+00> : vector<16x128xf32>
      %132 = tpu.matmul %130, %131, %cst_75 {dimension_numbers = #tpu.dot_dimension_numbers<[1], [0], [0], [1], [0, 0, 1, 1], [], []>} : vector<16x128xbf16>, vector<128x128xbf16>, vector<16x128xf32> -> vector<16x128xf32>
      %c0_76 = arith.constant 0 : index
      %c0_77 = arith.constant 0 : index
      %133 = vector.load %arg4[%c0_76, %c0_77] : memref<1x128xf32, #tpu.memory_space<vmem>>, vector<1x128xf32>
      %134 = vector.broadcast %133 : vector<1x128xf32> to vector<16x128xf32>
      %135 = arith.addf %132, %134 : vector<16x128xf32>
      %cst_78 = arith.constant 0.000000e+00 : f32
      %cst_79 = arith.constant 6.000000e+00 : f32
      %136 = vector.broadcast %cst_78 : f32 to vector<16x128xf32>
      %137 = arith.maximumf %136, %135 : vector<16x128xf32>
      %138 = vector.broadcast %cst_79 : f32 to vector<16x128xf32>
      %139 = arith.minimumf %138, %137 : vector<16x128xf32>
      %140 = vector.shape_cast %139 : vector<16x128xf32> to vector<1x16x128xf32>
      %c17 = arith.constant 17 : index
      %c8_80 = arith.constant 8 : index
      %c0_81 = arith.constant 0 : index
      %141 = vector.load %arg10[%c17, %c8_80, %c0_81] : memref<18x32x128xf32, #tpu.memory_space<vmem>>, vector<1x16x128xf32>
      tpu.vector_store %arg10[%c17, %c8_80, %c0_81], %140 {strides = array<i32>} : memref<18x32x128xf32, #tpu.memory_space<vmem>>, vector<1x16x128xf32>,
    } else {
    }
    %c16_i32_16 = arith.constant 16 : i32
    %31 = arith.cmpi sge, %27, %c16_i32_16 : i32
    %32 = arith.extui %31 : i1 to i32
    %c0_i32_17 = arith.constant 0 : i32
    %33 = arith.cmpi ne, %32, %c0_i32_17 : i32
    scf.if %33 {
      %cst_70 = arith.constant 0.000000e+00 : f32
      %126 = vector.broadcast %cst_70 : f32 to vector<1x16x128xf32>
      %c17 = arith.constant 17 : index
      %c8_71 = arith.constant 8 : index
      %c0_72 = arith.constant 0 : index
      %127 = vector.load %arg10[%c17, %c8_71, %c0_72] : memref<18x32x128xf32, #tpu.memory_space<vmem>>, vector<1x16x128xf32>
      tpu.vector_store %arg10[%c17, %c8_71, %c0_72], %126 {strides = array<i32>} : memref<18x32x128xf32, #tpu.memory_space<vmem>>, vector<1x16x128xf32>,
    } else {
    }
    %cst_18 = arith.constant 0.000000e+00 : f32
    %34 = vector.broadcast %cst_18 : f32 to vector<18x1x128xf32>
    %c0_19 = arith.constant 0 : index
    %c7 = arith.constant 7 : index
    %c0_20 = arith.constant 0 : index
    %35 = vector.load %arg10[%c0_19, %c7, %c0_20] : memref<18x32x128xf32, #tpu.memory_space<vmem>>, vector<18x1x128xf32>
    tpu.vector_store %arg10[%c0_19, %c7, %c0_20], %34 {strides = array<i32>} : memref<18x32x128xf32, #tpu.memory_space<vmem>>, vector<18x1x128xf32>,
    %c0_21 = arith.constant 0 : index
    %c24 = arith.constant 24 : index
    %c0_22 = arith.constant 0 : index
    %36 = vector.load %arg10[%c0_21, %c24, %c0_22] : memref<18x32x128xf32, #tpu.memory_space<vmem>>, vector<18x1x128xf32>
    tpu.vector_store %arg10[%c0_21, %c24, %c0_22], %34 {strides = array<i32>} : memref<18x32x128xf32, #tpu.memory_space<vmem>>, vector<18x1x128xf32>,
    %c0_23 = arith.constant 0 : index
    %c0_24 = arith.constant 0 : index
    %c0_25 = arith.constant 0 : index
    %37 = vector.load %arg5[%c0_23, %c0_24, %c0_25] : memref<3x3x128xf32, #tpu.memory_space<vmem>>, vector<3x3x128xf32>
    %c0_26 = arith.constant 0 : index
    %c0_27 = arith.constant 0 : index
    %c0_28 = arith.constant 0 : index
    %38 = vector.load %arg6[%c0_26, %c0_27, %c0_28] : memref<1x1x128xf32, #tpu.memory_space<vmem>>, vector<1x1x128xf32>
    %c0_29 = arith.constant 0 : index
    %c0_30 = arith.constant 0 : index
    %39 = vector.load %arg8[%c0_29, %c0_30] : memref<1x128xf32, #tpu.memory_space<vmem>>, vector<1x128xf32>
    %cst_31 = arith.constant 0.000000e+00 : f32
    %40 = vector.broadcast %cst_31 : f32 to vector<16x16x128xf32>
    %c0_32 = arith.constant 0 : index
    %c7_33 = arith.constant 7 : index
    %c0_34 = arith.constant 0 : index
    %41 = vector.load %arg10[%c0_32, %c7_33, %c0_34] : memref<18x32x128xf32, #tpu.memory_space<vmem>>, vector<16x16x128xf32>
    %42 = vector.extract_strided_slice %37 {offsets = [0, 0, 0], sizes = [1, 1, 128], strides = [1, 1, 1]} : vector<3x3x128xf32> to vector<1x1x128xf32>
    %43 = vector.shape_cast %42 : vector<1x1x128xf32> to vector<1x128xf32>
    %44 = vector.shape_cast %43 : vector<1x128xf32> to vector<1x1x128xf32>
    %45 = vector.broadcast %44 : vector<1x1x128xf32> to vector<16x16x128xf32>
    %46 = arith.mulf %41, %45 : vector<16x16x128xf32>
    %47 = arith.addf %40, %46 : vector<16x16x128xf32>
    %c0_35 = arith.constant 0 : index
    %c8_36 = arith.constant 8 : index
    %c0_37 = arith.constant 0 : index
    %48 = vector.load %arg10[%c0_35, %c8_36, %c0_37] : memref<18x32x128xf32, #tpu.memory_space<vmem>>, vector<16x16x128xf32>
    %49 = vector.extract_strided_slice %37 {offsets = [0, 1, 0], sizes = [1, 1, 128], strides = [1, 1, 1]} : vector<3x3x128xf32> to vector<1x1x128xf32>
    %50 = vector.shape_cast %49 : vector<1x1x128xf32> to vector<1x128xf32>
    %51 = vector.shape_cast %50 : vector<1x128xf32> to vector<1x1x128xf32>
    %52 = vector.broadcast %51 : vector<1x1x128xf32> to vector<16x16x128xf32>
    %53 = arith.mulf %48, %52 : vector<16x16x128xf32>
    %54 = arith.addf %47, %53 : vector<16x16x128xf32>
    %c0_38 = arith.constant 0 : index
    %c9 = arith.constant 9 : index
    %c0_39 = arith.constant 0 : index
    %55 = vector.load %arg10[%c0_38, %c9, %c0_39] : memref<18x32x128xf32, #tpu.memory_space<vmem>>, vector<16x16x128xf32>
    %56 = vector.extract_strided_slice %37 {offsets = [0, 2, 0], sizes = [1, 1, 128], strides = [1, 1, 1]} : vector<3x3x128xf32> to vector<1x1x128xf32>
    %57 = vector.shape_cast %56 : vector<1x1x128xf32> to vector<1x128xf32>
    %58 = vector.shape_cast %57 : vector<1x128xf32> to vector<1x1x128xf32>
    %59 = vector.broadcast %58 : vector<1x1x128xf32> to vector<16x16x128xf32>
    %60 = arith.mulf %55, %59 : vector<16x16x128xf32>
    %61 = arith.addf %54, %60 : vector<16x16x128xf32>
    %c1_40 = arith.constant 1 : index
    %c7_41 = arith.constant 7 : index
    %c0_42 = arith.constant 0 : index
    %62 = vector.load %arg10[%c1_40, %c7_41, %c0_42] : memref<18x32x128xf32, #tpu.memory_space<vmem>>, vector<16x16x128xf32>
    %63 = vector.extract_strided_slice %37 {offsets = [1, 0, 0], sizes = [1, 1, 128], strides = [1, 1, 1]} : vector<3x3x128xf32> to vector<1x1x128xf32>
    %64 = vector.shape_cast %63 : vector<1x1x128xf32> to vector<1x128xf32>
    %65 = vector.shape_cast %64 : vector<1x128xf32> to vector<1x1x128xf32>
    %66 = vector.broadcast %65 : vector<1x1x128xf32> to vector<16x16x128xf32>
    %67 = arith.mulf %62, %66 : vector<16x16x128xf32>
    %68 = arith.addf %61, %67 : vector<16x16x128xf32>
    %c1_43 = arith.constant 1 : index
    %c8_44 = arith.constant 8 : index
    %c0_45 = arith.constant 0 : index
    %69 = vector.load %arg10[%c1_43, %c8_44, %c0_45] : memref<18x32x128xf32, #tpu.memory_space<vmem>>, vector<16x16x128xf32>
    %70 = vector.extract_strided_slice %37 {offsets = [1, 1, 0], sizes = [1, 1, 128], strides = [1, 1, 1]} : vector<3x3x128xf32> to vector<1x1x128xf32>
    %71 = vector.shape_cast %70 : vector<1x1x128xf32> to vector<1x128xf32>
    %72 = vector.shape_cast %71 : vector<1x128xf32> to vector<1x1x128xf32>
    %73 = vector.broadcast %72 : vector<1x1x128xf32> to vector<16x16x128xf32>
    %74 = arith.mulf %69, %73 : vector<16x16x128xf32>
    %75 = arith.addf %68, %74 : vector<16x16x128xf32>
    %c1_46 = arith.constant 1 : index
    %c9_47 = arith.constant 9 : index
    %c0_48 = arith.constant 0 : index
    %76 = vector.load %arg10[%c1_46, %c9_47, %c0_48] : memref<18x32x128xf32, #tpu.memory_space<vmem>>, vector<16x16x128xf32>
    %77 = vector.extract_strided_slice %37 {offsets = [1, 2, 0], sizes = [1, 1, 128], strides = [1, 1, 1]} : vector<3x3x128xf32> to vector<1x1x128xf32>
    %78 = vector.shape_cast %77 : vector<1x1x128xf32> to vector<1x128xf32>
    %79 = vector.shape_cast %78 : vector<1x128xf32> to vector<1x1x128xf32>
    %80 = vector.broadcast %79 : vector<1x1x128xf32> to vector<16x16x128xf32>
    %81 = arith.mulf %76, %80 : vector<16x16x128xf32>
    %82 = arith.addf %75, %81 : vector<16x16x128xf32>
    %c2 = arith.constant 2 : index
    %c7_49 = arith.constant 7 : index
    %c0_50 = arith.constant 0 : index
    %83 = vector.load %arg10[%c2, %c7_49, %c0_50] : memref<18x32x128xf32, #tpu.memory_space<vmem>>, vector<16x16x128xf32>
    %84 = vector.extract_strided_slice %37 {offsets = [2, 0, 0], sizes = [1, 1, 128], strides = [1, 1, 1]} : vector<3x3x128xf32> to vector<1x1x128xf32>
    %85 = vector.shape_cast %84 : vector<1x1x128xf32> to vector<1x128xf32>
    %86 = vector.shape_cast %85 : vector<1x128xf32> to vector<1x1x128xf32>
    %87 = vector.broadcast %86 : vector<1x1x128xf32> to vector<16x16x128xf32>
    %88 = arith.mulf %83, %87 : vector<16x16x128xf32>
    %89 = arith.addf %82, %88 : vector<16x16x128xf32>
    %c2_51 = arith.constant 2 : index
    %c8_52 = arith.constant 8 : index
    %c0_53 = arith.constant 0 : index
    %90 = vector.load %arg10[%c2_51, %c8_52, %c0_53] : memref<18x32x128xf32, #tpu.memory_space<vmem>>, vector<16x16x128xf32>
    %91 = vector.extract_strided_slice %37 {offsets = [2, 1, 0], sizes = [1, 1, 128], strides = [1, 1, 1]} : vector<3x3x128xf32> to vector<1x1x128xf32>
    %92 = vector.shape_cast %91 : vector<1x1x128xf32> to vector<1x128xf32>
    %93 = vector.shape_cast %92 : vector<1x128xf32> to vector<1x1x128xf32>
    %94 = vector.broadcast %93 : vector<1x1x128xf32> to vector<16x16x128xf32>
    %95 = arith.mulf %90, %94 : vector<16x16x128xf32>
    %96 = arith.addf %89, %95 : vector<16x16x128xf32>
    %c2_54 = arith.constant 2 : index
    %c9_55 = arith.constant 9 : index
    %c0_56 = arith.constant 0 : index
    %97 = vector.load %arg10[%c2_54, %c9_55, %c0_56] : memref<18x32x128xf32, #tpu.memory_space<vmem>>, vector<16x16x128xf32>
    %98 = vector.extract_strided_slice %37 {offsets = [2, 2, 0], sizes = [1, 1, 128], strides = [1, 1, 1]} : vector<3x3x128xf32> to vector<1x1x128xf32>
    %99 = vector.shape_cast %98 : vector<1x1x128xf32> to vector<1x128xf32>
    %100 = vector.shape_cast %99 : vector<1x128xf32> to vector<1x1x128xf32>
    %101 = vector.broadcast %100 : vector<1x1x128xf32> to vector<16x16x128xf32>
    %102 = arith.mulf %97, %101 : vector<16x16x128xf32>
    %103 = arith.addf %96, %102 : vector<16x16x128xf32>
    %104 = vector.broadcast %38 : vector<1x1x128xf32> to vector<16x16x128xf32>
    %105 = arith.addf %103, %104 : vector<16x16x128xf32>
    %cst_57 = arith.constant 0.000000e+00 : f32
    %cst_58 = arith.constant 6.000000e+00 : f32
    %106 = vector.broadcast %cst_57 : f32 to vector<16x16x128xf32>
    %107 = arith.maximumf %106, %105 : vector<16x16x128xf32>
    %108 = vector.broadcast %cst_58 : f32 to vector<16x16x128xf32>
    %109 = arith.minimumf %108, %107 : vector<16x16x128xf32>
    %110 = arith.truncf %109 : vector<16x16x128xf32> to vector<16x16x128xbf16>
    %111 = vector.shape_cast %110 : vector<16x16x128xbf16> to vector<256x128xbf16>
    %c0_59 = arith.constant 0 : index
    %c0_60 = arith.constant 0 : index
    %112 = vector.load %arg7[%c0_59, %c0_60] : memref<128x128xbf16, #tpu.memory_space<vmem>>, vector<128x128xbf16>
    %cst_61 = arith.constant dense<0.000000e+00> : vector<256x128xf32>
    %113 = tpu.matmul %111, %112, %cst_61 {dimension_numbers = #tpu.dot_dimension_numbers<[1], [0], [0], [1], [0, 0, 1, 1], [], []>} : vector<256x128xbf16>, vector<128x128xbf16>, vector<256x128xf32> -> vector<256x128xf32>
    %114 = vector.broadcast %39 : vector<1x128xf32> to vector<256x128xf32>
    %115 = arith.addf %113, %114 : vector<256x128xf32>
    %116 = vector.shape_cast %115 : vector<256x128xf32> to vector<16x16x128xf32>
    %c16_i32_62 = arith.constant 16 : i32
    %117 = arith.muli %arg1, %c16_i32_62 : i32
    %118 = tpu.assume_multiple %117, 16 : i32
    %c0_63 = arith.constant 0 : index
    %119 = arith.index_cast %118 : i32 to index
    %c0_64 = arith.constant 0 : index
    %c0_65 = arith.constant 0 : index
    %120 = vector.load %arg2[%c0_63, %119, %c0_64, %c0_65] : memref<1x16x16x128xf32, #tpu.memory_space<vmem>>, vector<1x16x16x128xf32>
    %121 = vector.shape_cast %120 : vector<1x16x16x128xf32> to vector<16x16x128xf32>
    %122 = arith.addf %116, %121 : vector<16x16x128xf32>
    %c0_66 = arith.constant 0 : index
    %c0_67 = arith.constant 0 : index
    %c0_68 = arith.constant 0 : index
    %c0_69 = arith.constant 0 : index
    %123 = vector.load %arg9[%c0_66, %c0_67, %c0_68, %c0_69] : memref<1x16x16x128xf32, #tpu.memory_space<vmem>>, vector<1x16x16x128xf32>
    %124 = vector.shape_cast %123 : vector<1x16x16x128xf32> to vector<16x16x128xf32>
    %125 = vector.shape_cast %122 : vector<16x16x128xf32> to vector<1x16x16x128xf32>
    tpu.vector_store %arg9[%c0_66, %c0_67, %c0_68, %c0_69], %125 {strides = array<i32>} : memref<1x16x16x128xf32, #tpu.memory_space<vmem>>, vector<1x16x16x128xf32>,
    return
  }
  func.func @transform_0(%arg0: i32, %arg1: i32) -> (i32, i32, i32, i32) {
    %c0_i32 = arith.constant 0 : i32
    %c0_i32_0 = arith.constant 0 : i32
    %c0_i32_1 = arith.constant 0 : i32
    %c0_i32_2 = arith.constant 0 : i32
    return %arg0, %c0_i32, %c0_i32_0, %c0_i32_1 : i32, i32, i32, i32
  }
  func.func @transform_1(%arg0: i32, %arg1: i32) -> (i32, i32) {
    %c0_i32 = arith.constant 0 : i32
    %c0_i32_0 = arith.constant 0 : i32
    %c0_i32_1 = arith.constant 0 : i32
    return %c0_i32, %c0_i32_0 : i32, i32
  }
  func.func @transform_2(%arg0: i32, %arg1: i32) -> (i32, i32) {
    %c0_i32 = arith.constant 0 : i32
    %c0_i32_0 = arith.constant 0 : i32
    %c0_i32_1 = arith.constant 0 : i32
    return %c0_i32, %c0_i32_0 : i32, i32
  }
  func.func @transform_3(%arg0: i32, %arg1: i32) -> (i32, i32, i32) {
    %c0_i32 = arith.constant 0 : i32
    %c0_i32_0 = arith.constant 0 : i32
    %c0_i32_1 = arith.constant 0 : i32
    %c0_i32_2 = arith.constant 0 : i32
    return %c0_i32, %c0_i32_0, %c0_i32_1 : i32, i32, i32
  }
  func.func @transform_4(%arg0: i32, %arg1: i32) -> (i32, i32, i32) {
    %c0_i32 = arith.constant 0 : i32
    %c0_i32_0 = arith.constant 0 : i32
    %c0_i32_1 = arith.constant 0 : i32
    %c0_i32_2 = arith.constant 0 : i32
    return %c0_i32, %c0_i32_0, %c0_i32_1 : i32, i32, i32
  }
  func.func @transform_5(%arg0: i32, %arg1: i32) -> (i32, i32) {
    %c0_i32 = arith.constant 0 : i32
    %c0_i32_0 = arith.constant 0 : i32
    %c0_i32_1 = arith.constant 0 : i32
    return %c0_i32, %c0_i32_0 : i32, i32
  }
  func.func @transform_6(%arg0: i32, %arg1: i32) -> (i32, i32) {
    %c0_i32 = arith.constant 0 : i32
    %c0_i32_0 = arith.constant 0 : i32
    %c0_i32_1 = arith.constant 0 : i32
    return %c0_i32, %c0_i32_0 : i32, i32
  }
  func.func @transform_7(%arg0: i32, %arg1: i32) -> (i32, i32, i32, i32) {
    %c0_i32 = arith.constant 0 : i32
    %c0_i32_0 = arith.constant 0 : i32
    %c0_i32_1 = arith.constant 0 : i32
    return %arg0, %arg1, %c0_i32, %c0_i32_0 : i32, i32, i32, i32
  }
}

</mosaic_0001>

<bundles_post_ra>
// kernel: inverted_residual_forward.1
= control target key start
LH: loop header
LB: loop body
LE: loop exit
PB: predicated region body
PF: predicated region fallthrough
CT: control target
= control target key end

     0   :  { %s2743_s24 = smov 0   ;;  %s2745_s25 = smov 0   ;;  %s3768_s0 = inlined_call_operand.vmem [shape: f32[2,16,16,128], index: 0, kind: input, shape index: {}]   ;;  %s3769_s1 = inlined_call_operand.vmem [shape: bf16[128,128], index: 1, kind: input, shape index: {}]   ;;  %s3770_s2 = inlined_call_operand.vmem [shape: f32[1,128], index: 2, kind: input, shape index: {}]   ;;  %s3771_s3 = inlined_call_operand.vmem [shape: f32[3,3,128], index: 3, kind: input, shape index: {}]   ;;  %s3772_s4 = inlined_call_operand.vmem [shape: f32[1,1,128], index: 4, kind: input, shape index: {}]   ;;  %s3773_s5 = inlined_call_operand.vmem [shape: bf16[128,128], index: 5, kind: input, shape index: {}]   ;;  %s3774_s6 = inlined_call_operand.vmem [shape: f32[1,128], index: 6, kind: input, shape index: {}]   ;;  %s3775_s7 = inlined_call_operand.vmem [shape: f32[2,16,16,128], index: 7, kind: output, shape index: {}]  }
   0x1   :  { %s2747_s26 = smov 0  }
   0x2 LB: > { %s29_s27 = sadd.s32 1, %s2696_s25  ;;  %p2441_p0 = scmp.ge.s32.totalorder %s2700_s26, 1  ;;  %s2700_s26 = sphi %s2747_s26, %s17_s26   ;;  %s2696_s25 = sphi %s2745_s25, %s3777_s25   ;;  %s2692_s24 = sphi %s2743_s24, %s3776_s24  }
   0x3   : > { %p31_p1 = scmp.ge.s32.totalorder %s29_s27, 2  ;;  %p251_p2 = scmp.lt.s32.totalorder %s2700_s26, 3 }
   0x5   : > { %s3779_s27 = smov (%p31_p1, %s29_s27), 0  ;;  %p252_p3 = pnand %p2441_p0, %p251_p2 }
   0x6   : > { %v2660_v0 = vld [vmem:[%s3769_s1] sm:$0xff] (!%p252_p3)   ;;  %p288_p4 = scmp.lt.s32.totalorder (!%p252_p3), %s2692_s24, 1  ;;  %v2661_v1 = vld [vmem:[%s3769_s1 + $0x8] sm:$0xff] (!%p252_p3)   ;;  %v2662_v2 = vld [vmem:[%s3769_s1 + $0x10] sm:$0xff] (!%p252_p3)   ;;  %v2702_v56 = vmov (!%p252_p3), 0.0  }
   0x7   : > { %255 = sbr.rel (%p252_p3) target bundleno = 676 (0x2a4), region = 48  ;;  %2539 = vmatprep.subr.bf16.mxu0 (!%p252_p3), %v2660_v0  ;;  %v2663_v3 = vld [vmem:[%s3769_s1 + $0x18] sm:$0xff] (!%p252_p3)   ;;  %v2664_v7 = vld [vmem:[%s3769_s1 + $0x20] sm:$0xff] (!%p252_p3)   ;;  %v2665_v8 = vld [vmem:[%s3769_s1 + $0x28] sm:$0xff] (!%p252_p3)   ;;  %817 = vst [vmem:[#allocation2 + $0x8] sm:$0xff] (!%p252_p3), %v2702_v56 }
   0x8   : > { %2540 = vmatpush3.bf16.msra.mxu0 (!%p252_p3), %v2660_v0  ;;  %v2666_v9 = vld [vmem:[%s3769_s1 + $0x30] sm:$0xff] (!%p252_p3)   ;;  %v2667_v10 = vld [vmem:[%s3769_s1 + $0x38] sm:$0xff] (!%p252_p3)   ;;  %818 = vst [vmem:[#allocation2 + $0x10] sm:$0xff] (!%p252_p3), %v2702_v56  ;;  %955 = vst [vmem:[#allocation2 + $0x7] sm:$0x1] (!%p252_p3), %v2702_v56 }
   0x9   : > { %2541 = vmatprep.subr.bf16.mxu0 (!%p252_p3), %v2661_v1  ;;  %956 = vst [vmem:[#allocation2 + $0x27] sm:$0x1] (!%p252_p3), %v2702_v56  ;;  %957 = vst [vmem:[#allocation2 + $0x47] sm:$0x1] (!%p252_p3), %v2702_v56  ;;  %v2668_v57 = vld [vmem:[%s3773_s5] sm:$0xff] (!%p252_p3)   ;;  %v2669_v58 = vld [vmem:[%s3773_s5 + $0x8] sm:$0xff] (!%p252_p3)  }
   0xa   : > { %973 = vst [vmem:[#allocation2 + $0x18] sm:$0x1] (!%p252_p3), %v2702_v56  ;;  %974 = vst [vmem:[#allocation2 + $0x38] sm:$0x1] (!%p252_p3), %v2702_v56  ;;  %2587 = vmatprep.subr.bf16.mxu1 (!%p252_p3), %v2668_v57  ;;  %v2670_v59 = vld [vmem:[%s3773_s5 + $0x10] sm:$0xff] (!%p252_p3)   ;;  %v2671_v60 = vld [vmem:[%s3773_s5 + $0x18] sm:$0xff] (!%p252_p3)  }
   0xb   : > { %975 = vst [vmem:[#allocation2 + $0x58] sm:$0x1] (!%p252_p3), %v2702_v56  ;;  %953 = vst [vmem:[#allocation2 + $0x228] sm:$0xff] (!%p252_p3), %v2702_v56  ;;  %2588 = vmatpush3.bf16.msra.mxu1 (!%p252_p3), %v2668_v57  ;;  %v2672_v61 = vld [vmem:[%s3773_s5 + $0x20] sm:$0xff] (!%p252_p3)   ;;  %v2673_v62 = vld [vmem:[%s3773_s5 + $0x28] sm:$0xff] (!%p252_p3)  }
   0xc   : > { %2542 = vmatpush3.bf16.msra.mxu0 (!%p252_p3), %v2661_v1  ;;  %954 = vst [vmem:[#allocation2 + $0x230] sm:$0xff] (!%p252_p3), %v2702_v56  ;;  %958 = vst [vmem:[#allocation2 + $0x67] sm:$0x1] (!%p252_p3), %v2702_v56  ;;  %2589 = vmatprep.subr.bf16.mxu1 (!%p252_p3), %v2669_v58  ;;  %v2674_v63 = vld [vmem:[%s3773_s5 + $0x30] sm:$0xff] (!%p252_p3)   ;;  %v2675_v0 = vld [vmem:[%s3773_s5 + $0x38] sm:$0xff] (!%p252_p3)   ;;  %v1028_v1 = vlaneseq (!%p252_p3) }
   0xd   : > { %2543 = vmatprep.subr.bf16.mxu0 (!%p252_p3), %v2662_v2  ;;  %959 = vst [vmem:[#allocation2 + $0x87] sm:$0x1] (!%p252_p3), %v2702_v56  ;;  %960 = vst [vmem:[#allocation2 + $0xa7] sm:$0x1] (!%p252_p3), %v2702_v56 }
   0xe   : > { %s3781_s24 = smov (!%p288_p4, %s2692_s24), 1  ;;  %961 = vst [vmem:[#allocation2 + $0xc7] sm:$0x1] %v2702_v56  ;;  %962 = vst [vmem:[#allocation2 + $0xe7] sm:$0x1] %v2702_v56 }
   0xf   : > { %s2489_s11 = sshll.u32 %s3781_s24, 8  ;;  %963 = vst [vmem:[#allocation2 + $0x107] sm:$0x1] %v2702_v56  ;;  %964 = vst [vmem:[#allocation2 + $0x127] sm:$0x1] %v2702_v56  ;;  %2590 = vmatpush3.bf16.msra.mxu1 %v2669_v58 }
  0x10   : > { %s2778_s14 = scalar_lea.vmem %s3768_s0, %s2489_s11  ;;  %2544 = vmatpush3.bf16.msra.mxu0 %v2662_v2  ;;  %965 = vst [vmem:[#allocation2 + $0x147] sm:$0x1] %v2702_v56  ;;  %966 = vst [vmem:[#allocation2 + $0x167] sm:$0x1] %v2702_v56  ;;  %2591 = vmatprep.subr.bf16.mxu1 %v2670_v59  ;;  %v1029_v2 = vshrl.u32 %v1028_v1, 7  ;;  %s3664_s23 = scalar_lea.vmem %s3775_s7, %s2489_s11 }
  0x11   : > { %v309_v4 = vld [vmem:[%s2778_s14] sm:$0xff]  ;;  %v310_v5 = vld [vmem:[%s2778_s14 + $0x8] sm:$0xff]  ;;  %2545 = vmatprep.subr.bf16.mxu0 %v2663_v3  ;;  %v311_v11 = vld [vmem:[%s2778_s14 + $0x10] sm:$0xff]  ;;  %967 = vst [vmem:[#allocation2 + $0x187] sm:$0x1] %v2702_v56 }
  0x12   : > { %v341_v6 = vpack.c.bf16 %v310_v5, %v309_v4  ;;  %v312_v12 = vld [vmem:[%s2778_s14 + $0x18] sm:$0xff]  ;;  %v313_v13 = vld [vmem:[%s2778_s14 + $0x20] sm:$0xff]  ;;  %v314_v14 = vld [vmem:[%s2778_s14 + $0x28] sm:$0xff]  ;;  %968 = vst [vmem:[#allocation2 + $0x1a7] sm:$0x1] %v2702_v56  ;;  %v1130_v4 = vsub.s32 1, %v1029_v2 }
  0x13   : > { %v342_v15 = vpack.c.bf16 %v312_v12, %v311_v11  ;;  %v343_v16 = vpack.c.bf16 %v314_v14, %v313_v13  ;;  %v315_v17 = vld [vmem:[%s2778_s14 + $0x30] sm:$0xff]  ;;  %v316_v18 = vld [vmem:[%s2778_s14 + $0x38] sm:$0xff]  ;;  %v317_v19 = vld [vmem:[%s2778_s14 + $0x40] sm:$0xff]  ;;  %969 = vst [vmem:[#allocation2 + $0x1c7] sm:$0x1] %v2702_v56  ;;  %2592 = vmatpush3.bf16.msra.mxu1 %v2670_v59 }
  0x14   : > { %2555 = vmatprep.mubr.bf16.mxu0 %v341_v6  ;;  %2546 = vmatpush3.bf16.msra.mxu0 %v2663_v3  ;;  %v318_v20 = vld [vmem:[%s2778_s14 + $0x48] sm:$0xff]  ;;  %v344_v21 = vpack.c.bf16 %v316_v18, %v315_v17  ;;  %v319_v23 = vld [vmem:[%s2778_s14 + $0x50] sm:$0xff]  ;;  %v320_v24 = vld [vmem:[%s2778_s14 + $0x58] sm:$0xff]  ;;  %970 = vst [vmem:[#allocation2 + $0x1e7] sm:$0x1] %v2702_v56  ;;  %v1030_v3 = vsub.s32 0, %v1029_v2 }
  0x15   : > { %2547 = vmatprep.subr.bf16.mxu0 %v2664_v7  ;;  %v345_v22 = vpack.c.bf16 %v318_v20, %v317_v19  ;;  %v321_v25 = vld [vmem:[%s2778_s14 + $0x60] sm:$0xff]  ;;  %v322_v26 = vld [vmem:[%s2778_s14 + $0x68] sm:$0xff]  ;;  %v346_v27 = vpack.c.bf16 %v320_v24, %v319_v23  ;;  %v323_v29 = vld [vmem:[%s2778_s14 + $0x70] sm:$0xff]  ;;  %971 = vst [vmem:[#allocation2 + $0x207] sm:$0x1] %v2702_v56  ;;  %2593 = vmatprep.subr.bf16.mxu1 %v2671_v60 }
  0x16   : > { %v347_v28 = vpack.c.bf16 %v322_v26, %v321_v25  ;;  %v324_v30 = vld [vmem:[%s2778_s14 + $0x78] sm:$0xff]  ;;  %v325_v31 = vld [vmem:[%s2778_s14 + $0x80] sm:$0xff]  ;;  %v326_v32 = vld [vmem:[%s2778_s14 + $0x88] sm:$0xff]  ;;  %972 = vst [vmem:[#allocation2 + $0x227] sm:$0x1] %v2702_v56 }
  0x17   : > { %v348_v33 = vpack.c.bf16 %v324_v30, %v323_v29  ;;  %v349_v34 = vpack.c.bf16 %v326_v32, %v325_v31  ;;  %v327_v35 = vld [vmem:[%s2778_s14 + $0x90] sm:$0xff]  ;;  %v328_v36 = vld [vmem:[%s2778_s14 + $0x98] sm:$0xff]  ;;  %v329_v37 = vld [vmem:[%s2778_s14 + $0xa0] sm:$0xff]  ;;  %976 = vst [vmem:[#allocation2 + $0x78] sm:$0x1] %v2702_v56  ;;  %2594 = vmatpush3.bf16.msra.mxu1 %v2671_v60 }
  0x18   : > { %2548 = vmatpush3.bf16.msra.mxu0 %v2664_v7  ;;  %v330_v38 = vld [vmem:[%s2778_s14 + $0xa8] sm:$0xff]  ;;  %v350_v39 = vpack.c.bf16 %v328_v36, %v327_v35  ;;  %v331_v41 = vld [vmem:[%s2778_s14 + $0xb0] sm:$0xff]  ;;  %v332_v42 = vld [vmem:[%s2778_s14 + $0xb8] sm:$0xff]  ;;  %977 = vst [vmem:[#allocation2 + $0x98] sm:$0x1] %v2702_v56  ;;  %2595 = vmatprep.subr.bf16.mxu1 %v2672_v61  ;;  %v1230_v7 = vsub.s32 2, %v1029_v2 }
  0x19   : > { %2549 = vmatprep.subr.bf16.mxu0 %v2665_v8  ;;  %v351_v40 = vpack.c.bf16 %v330_v38, %v329_v37  ;;  %v333_v43 = vld [vmem:[%s2778_s14 + $0xc0] sm:$0xff]  ;;  %v334_v44 = vld [vmem:[%s2778_s14 + $0xc8] sm:$0xff]  ;;  %v352_v45 = vpack.c.bf16 %v332_v42, %v331_v41  ;;  %v335_v47 = vld [vmem:[%s2778_s14 + $0xd0] sm:$0xff]  ;;  %978 = vst [vmem:[#allocation2 + $0xb8] sm:$0x1] %v2702_v56 }
  0x1a   : > { %v353_v46 = vpack.c.bf16 %v334_v44, %v333_v43  ;;  %v336_v48 = vld [vmem:[%s2778_s14 + $0xd8] sm:$0xff]  ;;  %v337_v49 = vld [vmem:[%s2778_s14 + $0xe0] sm:$0xff]  ;;  %v338_v50 = vld [vmem:[%s2778_s14 + $0xe8] sm:$0xff]  ;;  %979 = vst [vmem:[#allocation2 + $0xd8] sm:$0x1] %v2702_v56 }
  0x1b   : > { %v354_v51 = vpack.c.bf16 %v336_v48, %v335_v47  ;;  %v355_v52 = vpack.c.bf16 %v338_v50, %v337_v49  ;;  %v339_v53 = vld [vmem:[%s2778_s14 + $0xf0] sm:$0xff]  ;;  %v340_v54 = vld [vmem:[%s2778_s14 + $0xf8] sm:$0xff]  ;;  %980 = vst [vmem:[#allocation2 + $0xf8] sm:$0x1] %v2702_v56  ;;  %981 = vst [vmem:[#allocation2 + $0x118] sm:$0x1] %v2702_v56  ;;  %2596 = vmatpush3.bf16.msra.mxu1 %v2672_v61 }
  0x1c   : > { %2550 = vmatpush3.bf16.msra.mxu0 %v2665_v8  ;;  %v356_v55 = vpack.c.bf16 %v340_v54, %v339_v53  ;;  %982 = vst [vmem:[#allocation2 + $0x138] sm:$0x1] %v2702_v56  ;;  %983 = vst [vmem:[#allocation2 + $0x158] sm:$0x1] %v2702_v56  ;;  %2597 = vmatprep.subr.bf16.mxu1 %v2673_v62  ;;  %v991_v5 = vld [vmem:[%s3771_s3] sm:$0x7] }
  0x1d   : > { %2551 = vmatprep.subr.bf16.mxu0 %v2666_v9  ;;  %984 = vst [vmem:[#allocation2 + $0x178] sm:$0x1] %v2702_v56  ;;  %985 = vst [vmem:[#allocation2 + $0x198] sm:$0x1] %v2702_v56  ;;  %v2854_v6 = vrot.slane %v991_v5, %v1030_v3  ;;  %v2859_v8 = vld [vmem:[%s3770_s2] ss:$0 sm:$0xff]  ;;  %v2861_v11 = vrot.slane %v991_v5, %v1130_v4  ;;  %v2872_v19 = vrot.slane %v991_v5, %v1230_v7 }
  0x1e   : > { %986 = vst [vmem:[#allocation2 + $0x1b8] sm:$0x1] %v2702_v56  ;;  %987 = vst [vmem:[#allocation2 + $0x1d8] sm:$0x1] %v2702_v56  ;;  %v1196_v23 = vld [vmem:[#allocation2 + $0x9] sm:$0xff] }
  0x1f   : > { %988 = vst [vmem:[#allocation2 + $0x1f8] sm:$0x1] %v2702_v56  ;;  %989 = vst [vmem:[#allocation2 + $0x218] sm:$0x1] %v2702_v56  ;;  %2598 = vmatpush3.bf16.msra.mxu1 %v2673_v62  ;;  %v1132_v18 = vmul.f32 0.0, %v2861_v11  ;;  %v1232_v35 = vmul.f32 %v2872_v19, %v1196_v23 }
  0x20   : > { %2552 = vmatpush3.bf16.msra.mxu0 %v2666_v9  ;;  %990 = vst [vmem:[#allocation2 + $0x238] sm:$0x1] %v2702_v56  ;;  %2599 = vmatprep.subr.bf16.mxu1 %v2674_v63  ;;  %v996_v9 = vld [vmem:[#allocation2 + $0x7] sm:$0xff] }
  0x21   : > { %2553 = vmatprep.subr.bf16.mxu0 %v2667_v10  ;;  %v1032_v17 = vmul.f32 %v2854_v6, %v996_v9 }
  0x23   : > { %2600 = vmatpush3.bf16.msra.mxu1 %v2674_v63 }
  0x24   : > { %2554 = vmatpush3.bf16.msra.mxu0 %v2667_v10  ;;  %2601 = vmatprep.subr.bf16.mxu1 %v2675_v0  ;;  %v997_v10 = vld [vmem:[#allocation2 + $0xf] sm:$0xff] }
  0x27   : > { %2556 = vmatmul.mubr.bf16.vlgmr.msra.gmra.mrb[0].mxu0 %v342_v15  ;;  %2602 = vmatpush3.bf16.msra.mxu1 %v2675_v0  ;;  %v992_v15 = vld [vmem:[%s3771_s3 + $0x4] sm:$0x7] }
  0x28   : > { %2559 = vmatprep.mubr.bf16.mxu0 %v343_v16  ;;  %v993_v16 = vld [vmem:[%s3771_s3 + $0x8] sm:$0x7]  ;;  %v2878_v30 = vrot.slane %v992_v15, %v1130_v4  ;;  %v2884_v43 = vrot.slane %v992_v15, %v1030_v3  ;;  %v2889_v48 = vrot.slane %v992_v15, %v1230_v7 }
  0x29   : > { %v2880_v31 = vrot.slane %v993_v16, %v1130_v4  ;;  %v2886_v44 = vrot.slane %v993_v16, %v1030_v3  ;;  %v2891_v49 = vrot.slane %v993_v16, %v1230_v7 }
  0x2f   : > { %2560 = vmatmul.mubr.bf16.gmra.mrb[4].mxu0 %v344_v21 }
  0x30   : > { %2563 = vmatprep.mubr.bf16.mxu0 %v345_v22  ;;  %v1033_v22 = vmul.f32 %v2854_v6, %v997_v10 }
  0x32   : > { %v1165_v38 = vadd.f32 %v1132_v18, %v1033_v22 }
  0x37   : > { %2564 = vmatmul.mubr.bf16.gmra.mrb[8].mxu0 %v346_v27  ;;  %v1197_v27 = vld [vmem:[#allocation2 + $0x11] sm:$0xff] }
  0x38   : > { %2567 = vmatprep.mubr.bf16.mxu0 %v347_v28 }
  0x3f   : > { %2568 = vmatmul.mubr.bf16.gmra.mrb[12].mxu0 %v348_v33 }
  0x40   : > { %2571 = vmatprep.mubr.bf16.mxu0 %v349_v34  ;;  %v1164_v34 = vadd.f32 %v1132_v18, %v1032_v17 }
  0x42   : > { %v1264_v47 = vadd.f32 %v1232_v35, %v1164_v34 }
  0x47   : > { %2572 = vmatmul.mubr.bf16.gmra.mrb[16].mxu0 %v350_v39  ;;  %v1233_v39 = vmul.f32 %v2872_v19, %v1197_v27 }
  0x48   : > { %2575 = vmatprep.mubr.bf16.mxu0 %v351_v40 }
  0x4f   : > { %2576 = vmatmul.mubr.bf16.gmra.mrb[20].mxu0 %v352_v45 }
  0x50   : > { %2579 = vmatprep.mubr.bf16.mxu0 %v353_v46 }
  0x57   : > { %2580 = vmatmul.mubr.bf16.gmra.mrb[24].mxu0 %v354_v51 }
  0x58   : > { %2583 = vmatprep.mubr.bf16.mxu0 %v355_v52  ;;  %v1265_v52 = vadd.f32 %v1233_v39, %v1165_v38 }
  0x5f   : > { %2584 = vmatmul.mubr.bf16.gmra.mrb[28].mxu0 %v356_v55 }
  0xfa   : > { %v2557_v12 = vpop.f32.mrb[0].mxu0 }
  0xfb   : > { %v471_v13 = vadd.f32 %v2557_v12, %v2859_v8  ;;  %v462_v14 = vpop.f32.mrb[1].mxu0 }
  0xfc   : > { %v463_v20 = vadd.f32 %v2859_v8, %v462_v14  ;;  %v2558_v21 = vpop.f32.mrb[2].mxu0 }
  0xfd   : > { %v591_v24 = vmax.f32 %v471_v13, 0.0  ;;  %v474_v25 = vadd.f32 %v2558_v21, %v2859_v8  ;;  %v465_v26 = vpop.f32.mrb[3].mxu0 }
  0xfe   : > { %v589_v28 = vmax.f32 %v463_v20, 0.0  ;;  %v466_v29 = vadd.f32 %v2859_v8, %v465_v26 }
  0xff   : > { %v623_v32 = vmin.f32 %v591_v24, 6.0  ;;  %v592_v33 = vmax.f32 %v474_v25, 0.0 }
 0x100   : > { %v621_v36 = vmin.f32 %v589_v28, 6.0  ;;  %v590_v37 = vmax.f32 %v466_v29, 0.0 }
 0x101   : > { %656 = vst [vmem:[#allocation2 + $0x48] sm:$0xff] %v623_v32  ;;  %v624_v40 = vmin.f32 %v592_v33, 6.0  ;;  %v2895_v53 = vmul.f32 %v2880_v31, %v623_v32  ;;  %v2898_v54 = vmul.f32 %v2878_v30, %v623_v32  ;;  %v2903_v59 = vmul.f32 %v2861_v11, %v623_v32 }
 0x102   : > { %654 = vst [vmem:[#allocation2 + $0x28] sm:$0xff] %v621_v36  ;;  %v622_v41 = vmin.f32 %v590_v37, 6.0  ;;  %v2561_v42 = vpop.f32.mrb[4].mxu0  ;;  %v1432_v58 = vmul.f32 %v2878_v30, %v621_v36  ;;  %v1134_v63 = vmul.f32 %v2861_v11, %v621_v36 }
 0x103   : > { %657 = vst [vmem:[#allocation2 + $0x50] sm:$0xff] %v624_v40  ;;  %v487_v45 = vadd.f32 %v2561_v42, %v2859_v8  ;;  %v478_v46 = vpop.f32.mrb[5].mxu0  ;;  %v2907_v62 = vmul.f32 %v2880_v31, %v624_v40  ;;  %v2913_v2 = vmul.f32 %v2878_v30, %v624_v40  ;;  %v2916_v3 = vmul.f32 %v2861_v11, %v624_v40 }
 0x104   : > { %655 = vst [vmem:[#allocation2 + $0x30] sm:$0xff] %v622_v41  ;;  %v479_v50 = vadd.f32 %v2859_v8, %v478_v46  ;;  %v2562_v51 = vpop.f32.mrb[6].mxu0  ;;  %v1433_v7 = vmul.f32 %v2878_v30, %v622_v41  ;;  %v1135_v10 = vmul.f32 %v2861_v11, %v622_v41 }
 0x105   : > { %v595_v55 = vmax.f32 %v487_v45, 0.0  ;;  %v490_v56 = vadd.f32 %v2562_v51, %v2859_v8  ;;  %v481_v57 = vpop.f32.mrb[7].mxu0 }
 0x106   : > { %v593_v60 = vmax.f32 %v479_v50, 0.0  ;;  %v482_v61 = vadd.f32 %v2859_v8, %v481_v57 }
 0x107   : > { %v2910_v0 = vmin.f32 %v595_v55, 6.0  ;;  %v596_v1 = vmax.f32 %v490_v56, 0.0 }
 0x108   : > { %v2918_v4 = vmin.f32 %v593_v60, 6.0  ;;  %v594_v5 = vmax.f32 %v482_v61, 0.0  ;;  %v1597_v9 = vld [vmem:[#allocation2 + $0x47] sm:$0xff] }
 0x109   : > { %660 = vst [vmem:[#allocation2 + $0x88] sm:$0xff] %v2910_v0  ;;  %v2923_v12 = vmin.f32 %v596_v1, 6.0  ;;  %v1296_v13 = vld [vmem:[#allocation2 + $0x27] sm:$0xff]  ;;  %v1633_v14 = vmul.f32 %v2886_v44, %v1597_v9  ;;  %v2927_v15 = vmul.f32 %v1597_v9, %v2884_v43  ;;  %v2930_v16 = vmul.f32 %v1597_v9, %v2854_v6 }
 0x10a   : > { %658 = vst [vmem:[#allocation2 + $0x68] sm:$0xff] %v2918_v4  ;;  %v2933_v17 = vmin.f32 %v594_v5, 6.0  ;;  %v2565_v18 = vpop.f32.mrb[8].mxu0  ;;  %v1332_v20 = vmul.f32 %v2884_v43, %v1296_v13  ;;  %v2936_v21 = vld [vmem:[#allocation2 + $0x4f] sm:$0xff]  ;;  %v1034_v24 = vmul.f32 %v1296_v13, %v2854_v6  ;;  %v2945_v25 = vmul.f32 %v2880_v31, %v2918_v4 }
 0x10b   : > { %v2938_v22 = vld [vmem:[#allocation2 + $0x49] sm:$0xff]  ;;  %v2940_v23 = vld [vmem:[#allocation2 + $0x51] sm:$0xff]  ;;  %661 = vst [vmem:[#allocation2 + $0x90] sm:$0xff] %v2923_v12  ;;  %v503_v26 = vadd.f32 %v2565_v18, %v2859_v8  ;;  %v494_v27 = vpop.f32.mrb[9].mxu0  ;;  %v1634_v33 = vmul.f32 %v2886_v44, %v2936_v21 }
 0x10c   : > { %v1297_v28 = vld [vmem:[#allocation2 + $0x2f] sm:$0xff]  ;;  %v1833_v34 = vmul.f32 %v2891_v49, %v2938_v22  ;;  %v2955_v35 = vmul.f32 %v2891_v49, %v2940_v23  ;;  %659 = vst [vmem:[#allocation2 + $0x70] sm:$0xff] %v2933_v17  ;;  %v495_v36 = vadd.f32 %v2859_v8, %v494_v27  ;;  %v2566_v37 = vpop.f32.mrb[10].mxu0  ;;  %v1364_v39 = vadd.f32 %v1332_v20, %v1264_v47 }
 0x10d   : > { %v1496_v29 = vld [vmem:[#allocation2 + $0x29] sm:$0xff]  ;;  %v1497_v32 = vld [vmem:[#allocation2 + $0x31] sm:$0xff]  ;;  %v1333_v38 = vmul.f32 %v2884_v43, %v1297_v28  ;;  %v599_v41 = vmax.f32 %v503_v26, 0.0  ;;  %v506_v42 = vadd.f32 %v2566_v37, %v2859_v8  ;;  %v497_v45 = vpop.f32.mrb[11].mxu0  ;;  %v1035_v50 = vmul.f32 %v1297_v28, %v2854_v6 }
 0x10e   : > { %v1532_v40 = vmul.f32 %v2889_v48, %v1496_v29  ;;  %v1533_v46 = vmul.f32 %v2889_v48, %v1497_v32  ;;  %v597_v51 = vmax.f32 %v495_v36, 0.0  ;;  %v498_v55 = vadd.f32 %v2859_v8, %v497_v45 }
 0x10f   : > { %v1365_v56 = vadd.f32 %v1333_v38, %v1265_v52  ;;  %v1464_v57 = vadd.f32 %v1432_v58, %v1364_v39  ;;  %v2965_v60 = vmin.f32 %v599_v41, 6.0  ;;  %v600_v61 = vmax.f32 %v506_v42, 0.0 }
 0x110   : > { %v1166_v1 = vadd.f32 %v1134_v63, %v1034_v24  ;;  %v1167_v47 = vadd.f32 %v1135_v10, %v1035_v50  ;;  %v2967_v5 = vmin.f32 %v597_v51, 6.0  ;;  %v598_v9 = vmax.f32 %v498_v55, 0.0  ;;  %v2996_v51 = vld [vmem:[%s3772_s4] ss:$0 sm:$0xff] }
 0x111   : > { %v1465_v13 = vadd.f32 %v1433_v7, %v1365_v56  ;;  %v1564_v18 = vadd.f32 %v1532_v40, %v1464_v57  ;;  %664 = vst [vmem:[#allocation2 + $0xc8] sm:$0xff] %v2965_v60  ;;  %v2970_v20 = vmin.f32 %v600_v61, 6.0  ;;  %v1234_v26 = vmul.f32 %v1496_v29, %v2872_v19  ;;  %v2976_v58 = vld [vmem:[#allocation2 + $0x67] sm:$0xff] }
 0x112   : > { %v1235_v27 = vmul.f32 %v1497_v32, %v2872_v19  ;;  %v1335_v52 = vmul.f32 %v2936_v21, %v2884_v43  ;;  %662 = vst [vmem:[#allocation2 + $0xa8] sm:$0xff] %v2967_v5  ;;  %v2979_v63 = vmin.f32 %v598_v9, 6.0  ;;  %v2569_v10 = vpop.f32.mrb[12].mxu0  ;;  %v1534_v28 = vmul.f32 %v2938_v22, %v2889_v48 }
 0x113   : > { %v1565_v7 = vadd.f32 %v1533_v46, %v1465_v13  ;;  %v1665_v24 = vadd.f32 %v1633_v14, %v1564_v18  ;;  %665 = vst [vmem:[#allocation2 + $0xd0] sm:$0xff] %v2970_v20  ;;  %v519_v29 = vadd.f32 %v2569_v10, %v2859_v8  ;;  %v510_v32 = vpop.f32.mrb[13].mxu0  ;;  %v1266_v36 = vadd.f32 %v1234_v26, %v1166_v1  ;;  %v3001_v1 = vld [vmem:[#allocation2 + $0x6f] sm:$0xff] }
 0x114   : > { %v1267_v37 = vadd.f32 %v1235_v27, %v1167_v47  ;;  %v1535_v38 = vmul.f32 %v2940_v23, %v2889_v48  ;;  %663 = vst [vmem:[#allocation2 + $0xb0] sm:$0xff] %v2979_v63  ;;  %v511_v39 = vadd.f32 %v2859_v8, %v510_v32  ;;  %v2570_v40 = vpop.f32.mrb[14].mxu0  ;;  %v1635_v42 = vmul.f32 %v2886_v44, %v2976_v58  ;;  %v3009_v10 = vld [vmem:[#allocation2 + $0x69] sm:$0xff] }
 0x115   : > { %v1666_v41 = vadd.f32 %v1634_v33, %v1565_v7  ;;  %v1765_v14 = vadd.f32 %v2895_v53, %v1665_v24  ;;  %v603_v45 = vmax.f32 %v519_v29, 0.0  ;;  %v522_v46 = vadd.f32 %v2570_v40, %v2859_v8  ;;  %v513_v50 = vpop.f32.mrb[15].mxu0  ;;  %v3013_v29 = vld [vmem:[#allocation2 + $0x71] sm:$0xff] }
 0x116   : > { %v1366_v55 = vadd.f32 %v2927_v15, %v1266_v36  ;;  %v1367_v56 = vadd.f32 %v1335_v52, %v1267_v37  ;;  %v601_v57 = vmax.f32 %v511_v39, 0.0  ;;  %v514_v33 = vadd.f32 %v2859_v8, %v513_v50 }
 0x117   : > { %v1766_v53 = vadd.f32 %v2907_v62, %v1666_v41  ;;  %v1865_v61 = vadd.f32 %v1833_v34, %v1765_v14  ;;  %v635_v47 = vmin.f32 %v603_v45, 6.0  ;;  %v604_v9 = vmax.f32 %v522_v46, 0.0 }
 0x118   : > { %v1466_v13 = vadd.f32 %v2898_v54, %v1366_v55  ;;  %v1467_v18 = vadd.f32 %v2913_v2, %v1367_v56  ;;  %v3005_v26 = vmin.f32 %v601_v57, 6.0  ;;  %v602_v27 = vmax.f32 %v514_v33, 0.0 }
 0x119   : > { %v1866_v15 = vadd.f32 %v2955_v35, %v1766_v53  ;;  %v1903_v52 = vadd.f32 %v2996_v51, %v1865_v61  ;;  %668 = vst [vmem:[#allocation2 + $0x108] sm:$0xff] %v635_v47  ;;  %v636_v62 = vmin.f32 %v604_v9, 6.0  ;;  %v1636_v24 = vmul.f32 %v2886_v44, %v3001_v1 }
 0x11a   : > { %v1566_v34 = vadd.f32 %v1534_v28, %v1466_v13  ;;  %v1567_v7 = vadd.f32 %v1535_v38, %v1467_v18  ;;  %666 = vst [vmem:[#allocation2 + $0xe8] sm:$0xff] %v3005_v26  ;;  %v3016_v54 = vmin.f32 %v602_v27, 6.0  ;;  %v2573_v2 = vpop.f32.mrb[16].mxu0  ;;  %v1736_v36 = vmul.f32 %v2880_v31, %v2933_v17 }
 0x11b   : > { %v1904_v35 = vadd.f32 %v2996_v51, %v1866_v15  ;;  %v1935_v32 = vmax.f32 %v1903_v52, 0.0  ;;  %669 = vst [vmem:[#allocation2 + $0x110] sm:$0xff] %v636_v62  ;;  %v535_v28 = vadd.f32 %v2573_v2, %v2859_v8  ;;  %v526_v37 = vpop.f32.mrb[17].mxu0  ;;  %v1835_v40 = vmul.f32 %v2891_v49, %v3009_v10 }
 0x11c   : > { %v1667_v38 = vadd.f32 %v1635_v42, %v1566_v34  ;;  %v1668_v39 = vadd.f32 %v1636_v24, %v1567_v7  ;;  %667 = vst [vmem:[#allocation2 + $0xf0] sm:$0xff] %v3016_v54  ;;  %v527_v41 = vadd.f32 %v2859_v8, %v526_v37  ;;  %v2574_v14 = vpop.f32.mrb[18].mxu0  ;;  %v1836_v50 = vmul.f32 %v2891_v49, %v3013_v29 }
 0x11d   : > { %v1936_v45 = vmax.f32 %v1904_v35, 0.0  ;;  %v1967_v46 = vmin.f32 %v1935_v32, 6.0  ;;  %v607_v55 = vmax.f32 %v535_v28, 0.0  ;;  %v538_v56 = vadd.f32 %v2574_v14, %v2859_v8  ;;  %v529_v57 = vpop.f32.mrb[19].mxu0 }
 0x11e   : > { %v1767_v42 = vadd.f32 %v2945_v25, %v1667_v38  ;;  %v1768_v33 = vadd.f32 %v1736_v36, %v1668_v39  ;;  %v605_v53 = vmax.f32 %v527_v41, 0.0  ;;  %v530_v61 = vadd.f32 %v2859_v8, %v529_v57 }
 0x11f   : > { %v1968_v47 = vmin.f32 %v1936_v45, 6.0  ;;  %v1037_v9 = vmul.f32 %v2936_v21, %v2854_v6  ;;  %v639_v13 = vmin.f32 %v607_v55, 6.0  ;;  %v608_v18 = vmax.f32 %v538_v56, 0.0 }
 0x120   : > { %v1867_v27 = vadd.f32 %v1835_v40, %v1767_v42  ;;  %v1868_v15 = vadd.f32 %v1836_v50, %v1768_v33  ;;  %v637_v52 = vmin.f32 %v605_v53, 6.0  ;;  %v606_v62 = vmax.f32 %v530_v61, 0.0  ;;  %v3052_v61 = vld [vmem:[#allocation2 + $0x87] sm:$0xff] }
 0x121   : > { %v1999_v34 = vpack.c.bf16 %v1968_v47, %v1967_v46  ;;  %v1168_v7 = vadd.f32 %v2903_v59, %v2930_v16  ;;  %672 = vst [vmem:[#allocation2 + $0x148] sm:$0xff] %v639_v13  ;;  %v640_v25 = vmin.f32 %v608_v18, 6.0  ;;  %v1169_v35 = vadd.f32 %v2916_v3, %v1037_v9 }
 0x122   : > { %v1905_v24 = vadd.f32 %v2996_v51, %v1867_v27  ;;  %v1906_v2 = vadd.f32 %v2996_v51, %v1868_v15  ;;  %670 = vst [vmem:[#allocation2 + $0x128] sm:$0xff] %v637_v52  ;;  %v638_v21 = vmin.f32 %v606_v62, 6.0  ;;  %v2577_v32 = vpop.f32.mrb[20].mxu0  ;;  %v1236_v36 = vmul.f32 %v2938_v22, %v2872_v19  ;;  %v3056_v27 = vld [vmem:[#allocation2 + $0x8f] sm:$0xff] }
 0x123   : > { %2603 = vmatprep.mubr.bf16.mxu1 %v1999_v34  ;;  %v1237_v28 = vmul.f32 %v2940_v23, %v2872_v19  ;;  %v1336_v59 = vmul.f32 %v2976_v58, %v2884_v43  ;;  %673 = vst [vmem:[#allocation2 + $0x150] sm:$0xff] %v640_v25  ;;  %v551_v16 = vadd.f32 %v2577_v32, %v2859_v8  ;;  %v542_v37 = vpop.f32.mrb[21].mxu0 }
 0x124   : > { %v1937_v38 = vmax.f32 %v1905_v24, 0.0  ;;  %v1938_v39 = vmax.f32 %v1906_v2, 0.0  ;;  %v1337_v3 = vmul.f32 %v3001_v1, %v2884_v43  ;;  %671 = vst [vmem:[#allocation2 + $0x130] sm:$0xff] %v638_v21  ;;  %v543_v40 = vadd.f32 %v2859_v8, %v542_v37  ;;  %v2578_v41 = vpop.f32.mrb[22].mxu0  ;;  %v3066_v21 = vld [vmem:[#allocation2 + $0x91] sm:$0xff] }
 0x125   : > { %v1268_v22 = vadd.f32 %v1236_v36, %v1168_v7  ;;  %v1269_v14 = vadd.f32 %v1237_v28, %v1169_v35  ;;  %v1436_v23 = vmul.f32 %v2878_v30, %v2918_v4  ;;  %v611_v45 = vmax.f32 %v551_v16, 0.0  ;;  %v545_v50 = vpop.f32.mrb[23].mxu0  ;;  %v3060_v7 = vld [vmem:[#allocation2 + $0x89] sm:$0xff] }
 0x126   : > { %v554_v46 = vadd.f32 %v2578_v41, %v2859_v8  ;;  %v1969_v55 = vmin.f32 %v1937_v38, 6.0  ;;  %v1970_v56 = vmin.f32 %v1938_v39, 6.0  ;;  %v609_v57 = vmax.f32 %v543_v40, 0.0 }
 0x127   : > { %v546_v42 = vadd.f32 %v2859_v8, %v545_v50  ;;  %v1368_v33 = vadd.f32 %v1336_v59, %v1268_v22  ;;  %v1369_v53 = vadd.f32 %v1337_v3, %v1269_v14  ;;  %v643_v47 = vmin.f32 %v611_v45, 6.0 }
 0x128   : > { %v612_v9 = vmax.f32 %v554_v46, 0.0  ;;  %v2000_v13 = vpack.c.bf16 %v1970_v56, %v1969_v55  ;;  %v1437_v18 = vmul.f32 %v2878_v30, %v2933_v17  ;;  %v641_v15 = vmin.f32 %v609_v57, 6.0 }
 0x129   : > { %v610_v52 = vmax.f32 %v546_v42, 0.0  ;;  %v1468_v62 = vadd.f32 %v1436_v23, %v1368_v33  ;;  %v1536_v34 = vmul.f32 %v3009_v10, %v2889_v48  ;;  %676 = vst [vmem:[#allocation2 + $0x188] sm:$0xff] %v643_v47  ;;  %v1537_v2 = vmul.f32 %v3013_v29, %v2889_v48 }
 0x12a   : > { %v644_v25 = vmin.f32 %v612_v9, 6.0  ;;  %2604 = vmatmul.mubr.bf16.vlgmr.msra.gmra.mrb[0].mxu1 %v2000_v13  ;;  %v1469_v24 = vadd.f32 %v1437_v18, %v1369_v53  ;;  %v1637_v35 = vmul.f32 %v2886_v44, %v3052_v61  ;;  %674 = vst [vmem:[#allocation2 + $0x168] sm:$0xff] %v641_v15  ;;  %v2581_v36 = vpop.f32.mrb[24].mxu0  ;;  %v1638_v59 = vmul.f32 %v2886_v44, %v3056_v27 }
 0x12b   : > { %v642_v32 = vmin.f32 %v610_v52, 6.0  ;;  %v1568_v28 = vadd.f32 %v1536_v34, %v1468_v62  ;;  %v1737_v16 = vmul.f32 %v2880_v31, %v2910_v0  ;;  %v567_v37 = vadd.f32 %v2581_v36, %v2859_v8  ;;  %v558_v40 = vpop.f32.mrb[25].mxu0 }
 0x12c   : > { %677 = vst [vmem:[#allocation2 + $0x190] sm:$0xff] %v644_v25  ;;  %v1569_v38 = vadd.f32 %v1537_v2, %v1469_v24  ;;  %v1738_v39 = vmul.f32 %v2880_v31, %v2923_v12  ;;  %v1837_v3 = vmul.f32 %v2891_v49, %v3060_v7  ;;  %v1838_v22 = vmul.f32 %v2891_v49, %v3066_v21  ;;  %v2582_v23 = vpop.f32.mrb[26].mxu0 }
 0x12d   : > { %675 = vst [vmem:[#allocation2 + $0x170] sm:$0xff] %v642_v32  ;;  %v1669_v41 = vadd.f32 %v1637_v35, %v1568_v28  ;;  %v559_v14 = vadd.f32 %v2859_v8, %v558_v40  ;;  %v1038_v45 = vmul.f32 %v2976_v58, %v2854_v6  ;;  %v615_v46 = vmax.f32 %v567_v37, 0.0  ;;  %v561_v56 = vpop.f32.mrb[27].mxu0  ;;  %v3100_v37 = vld [vmem:[#allocation2 + $0xa7] sm:$0xff] }
 0x12e   : > { %v1670_v50 = vadd.f32 %v1638_v59, %v1569_v38  ;;  %v570_v55 = vadd.f32 %v2582_v23, %v2859_v8  ;;  %v1039_v57 = vmul.f32 %v3001_v1, %v2854_v6  ;;  %v562_v53 = vadd.f32 %v2859_v8, %v561_v56 }
 0x12f   : > { %v1769_v42 = vadd.f32 %v1737_v16, %v1669_v41  ;;  %v613_v33 = vmax.f32 %v559_v14, 0.0  ;;  %v1138_v47 = vmul.f32 %v2861_v11, %v2918_v4  ;;  %v647_v9 = vmin.f32 %v615_v46, 6.0  ;;  %v3116_v46 = vld [vmem:[#allocation2 + $0xa9] sm:$0xff] }
 0x130   : > { %v1770_v13 = vadd.f32 %v1738_v39, %v1670_v50  ;;  %v616_v18 = vmax.f32 %v570_v55, 0.0  ;;  %v1139_v58 = vmul.f32 %v2861_v11, %v2933_v17  ;;  %v614_v62 = vmax.f32 %v562_v53, 0.0 }
 0x131   : > { %v1869_v15 = vadd.f32 %v1837_v3, %v1769_v42  ;;  %v645_v52 = vmin.f32 %v613_v33, 6.0  ;;  %v1170_v34 = vadd.f32 %v1138_v47, %v1038_v45  ;;  %680 = vst [vmem:[#allocation2 + $0x1c8] sm:$0xff] %v647_v9  ;;  %v1238_v2 = vmul.f32 %v3009_v10, %v2872_v19  ;;  %v3102_v10 = vld [vmem:[#allocation2 + $0xaf] sm:$0xff] }
 0x132   : > { %v1870_v25 = vadd.f32 %v1838_v22, %v1770_v13  ;;  %v648_v1 = vmin.f32 %v616_v18, 6.0  ;;  %v1171_v24 = vadd.f32 %v1139_v58, %v1039_v57  ;;  %v646_v4 = vmin.f32 %v614_v62, 6.0  ;;  %v2585_v36 = vpop.f32.mrb[28].mxu0 }
 0x133   : > { %v1907_v35 = vadd.f32 %v2996_v51, %v1869_v15  ;;  %678 = vst [vmem:[#allocation2 + $0x1a8] sm:$0xff] %v645_v52  ;;  %v1239_v32 = vmul.f32 %v3013_v29, %v2872_v19  ;;  %v1270_v28 = vadd.f32 %v1238_v2, %v1170_v34  ;;  %v1338_v59 = vmul.f32 %v3052_v61, %v2884_v43  ;;  %v3104_v38 = vpop.f32.mrb[29].mxu0 }
 0x134   : > { %v1908_v17 = vadd.f32 %v2996_v51, %v1870_v25  ;;  %681 = vst [vmem:[#allocation2 + $0x1d0] sm:$0xff] %v648_v1  ;;  %v1339_v16 = vmul.f32 %v3056_v27, %v2884_v43  ;;  %679 = vst [vmem:[#allocation2 + $0x1b0] sm:$0xff] %v646_v4  ;;  %v1438_v3 = vmul.f32 %v2878_v30, %v2910_v0  ;;  %v3110_v41 = vpop.f32.mrb[30].mxu0 }
 0x135   : > { %v1939_v39 = vmax.f32 %v1907_v35, 0.0  ;;  %v1271_v29 = vadd.f32 %v1239_v32, %v1171_v24  ;;  %v1439_v40 = vmul.f32 %v2878_v30, %v2923_v12  ;;  %v1370_v14 = vadd.f32 %v1338_v59, %v1270_v28  ;;  %v577_v50 = vpop.f32.mrb[31].mxu0  ;;  %v3135_v24 = vld [vmem:[#allocation2 + $0xb1] sm:$0xff] }
 0x136   : > { %v1940_v22 = vmax.f32 %v1908_v17, 0.0  ;;  %v1538_v23 = vmul.f32 %v3060_v7, %v2889_v48  ;;  %v1539_v45 = vmul.f32 %v3066_v21, %v2889_v48  ;;  %v1639_v57 = vmul.f32 %v2886_v44, %v3100_v37 }
 0x137   : > { %v1971_v55 = vmin.f32 %v1939_v39, 6.0  ;;  %v1371_v56 = vadd.f32 %v1339_v16, %v1271_v29  ;;  %v1640_v42 = vmul.f32 %v2886_v44, %v3102_v10  ;;  %v1470_v53 = vadd.f32 %v1438_v3, %v1370_v14  ;;  %v3147_v16 = vld [vmem:[#allocation2 + $0xc7] sm:$0xff] }
 0x138   : > { %v1972_v33 = vmin.f32 %v1940_v22, 6.0  ;;  %v1739_v47 = vmul.f32 %v2880_v31, %v2967_v5  ;;  %v1740_v9 = vmul.f32 %v2880_v31, %v2979_v63  ;;  %v1839_v18 = vmul.f32 %v2891_v49, %v3116_v46 }
 0x139   : > { %v1471_v13 = vadd.f32 %v1439_v40, %v1371_v56  ;;  %v583_v58 = vadd.f32 %v2585_v36, %v2859_v8  ;;  %v1040_v15 = vmul.f32 %v3052_v61, %v2854_v6  ;;  %v1570_v62 = vadd.f32 %v1538_v23, %v1470_v53  ;;  %v3159_v23 = vld [vmem:[#allocation2 + $0xc9] sm:$0xff] }
 0x13a   : > { %v2001_v52 = vpack.c.bf16 %v1972_v33, %v1971_v55  ;;  %v1041_v34 = vmul.f32 %v3056_v27, %v2854_v6  ;;  %v1140_v25 = vmul.f32 %v2861_v11, %v2910_v0  ;;  %v1141_v35 = vmul.f32 %v2861_v11, %v2923_v12 }
 0x13b   : > { %v1571_v1 = vadd.f32 %v1539_v45, %v1471_v13  ;;  %v619_v2 = vmax.f32 %v583_v58, 0.0  ;;  %v1240_v4 = vmul.f32 %v3060_v7, %v2872_v19  ;;  %v1671_v61 = vadd.f32 %v1639_v57, %v1570_v62 }
 0x13c   : > { %2607 = vmatprep.mubr.bf16.mxu1 %v2001_v52  ;;  %v1172_v32 = vadd.f32 %v1140_v25, %v1040_v15  ;;  %v1241_v36 = vmul.f32 %v3066_v21, %v2872_v19  ;;  %v1340_v27 = vmul.f32 %v3100_v37, %v2884_v43  ;;  %v1173_v28 = vadd.f32 %v1141_v35, %v1041_v34  ;;  %v3153_v21 = vld [vmem:[#allocation2 + $0xcf] sm:$0xff] }
 0x13d   : > { %v1672_v0 = vadd.f32 %v1640_v42, %v1571_v1  ;;  %v651_v17 = vmin.f32 %v619_v2, 6.0  ;;  %v1341_v59 = vmul.f32 %v3102_v10, %v2884_v43  ;;  %v1771_v12 = vadd.f32 %v1739_v47, %v1671_v61 }
 0x13e   : > { %v1840_v7 = vmul.f32 %v2891_v49, %v3135_v24  ;;  %v1272_v39 = vadd.f32 %v1240_v4, %v1172_v32  ;;  %v1440_v29 = vmul.f32 %v2878_v30, %v2967_v5  ;;  %v1273_v40 = vadd.f32 %v1241_v36, %v1173_v28 }
 0x13f   : > { %v1772_v3 = vadd.f32 %v1740_v9, %v1672_v0  ;;  %684 = vst [vmem:[#allocation2 + $0x208] sm:$0xff] %v651_v17  ;;  %v1441_v22 = vmul.f32 %v2878_v30, %v2979_v63  ;;  %v1540_v14 = vmul.f32 %v3116_v46, %v2889_v48  ;;  %v1871_v45 = vadd.f32 %v1839_v18, %v1771_v12 }
 0x140   : > { %v1372_v55 = vadd.f32 %v1340_v27, %v1272_v39  ;;  %v1541_v56 = vmul.f32 %v3135_v24, %v2889_v48  ;;  %v1641_v57 = vmul.f32 %v2886_v44, %v3147_v16  ;;  %v1373_v33 = vadd.f32 %v1341_v59, %v1273_v40  ;;  %v1806_v27 = vld [vmem:[#allocation2 + $0xd1] sm:$0xff] }
 0x141   : > { %v1872_v42 = vadd.f32 %v1840_v7, %v1772_v3  ;;  %v1642_v53 = vmul.f32 %v2886_v44, %v3153_v21  ;;  %v1741_v47 = vmul.f32 %v2880_v31, %v2965_v60  ;;  %v1909_v9 = vadd.f32 %v2996_v51, %v1871_v45  ;;  %v1406_v7 = vld [vmem:[#allocation2 + $0xc8] sm:$0xff]  ;;  %v1407_v40 = vld [vmem:[#allocation2 + $0xd0] sm:$0xff] }
 0x142   : > { %v1472_v13 = vadd.f32 %v1440_v29, %v1372_v55  ;;  %v1742_v18 = vmul.f32 %v2880_v31, %v2970_v20  ;;  %v1841_v58 = vmul.f32 %v2891_v49, %v3159_v23  ;;  %v1473_v52 = vadd.f32 %v1441_v22, %v1373_v33  ;;  %v3193_v55 = vld [vmem:[#allocation2 + $0xe7] sm:$0xff] }
 0x143   : > { %v1910_v15 = vadd.f32 %v2996_v51, %v1872_v42  ;;  %v575_v62 = vadd.f32 %v2859_v8, %v3104_v38  ;;  %v586_v34 = vadd.f32 %v3110_v41, %v2859_v8  ;;  %v1941_v25 = vmax.f32 %v1909_v9, 0.0  ;;  %v3200_v42 = vld [vmem:[#allocation2 + $0xef] sm:$0xff] }
 0x144   : > { %v1572_v60 = vadd.f32 %v1540_v14, %v1472_v13  ;;  %v578_v1 = vadd.f32 %v2859_v8, %v577_v50  ;;  %v1042_v2 = vmul.f32 %v3100_v37, %v2854_v6  ;;  %v1573_v35 = vadd.f32 %v1541_v56, %v1473_v52  ;;  %v3204_v9 = vld [vmem:[#allocation2 + $0xe9] sm:$0xff] }
 0x145   : > { %v1942_v20 = vmax.f32 %v1910_v15, 0.0  ;;  %v617_v4 = vmax.f32 %v575_v62, 0.0  ;;  %v620_v61 = vmax.f32 %v586_v34, 0.0  ;;  %v1973_v32 = vmin.f32 %v1941_v25, 6.0 }
 0x146   : > { %v1673_v36 = vadd.f32 %v1641_v57, %v1572_v60  ;;  %v618_v0 = vmax.f32 %v578_v1, 0.0  ;;  %v1043_v38 = vmul.f32 %v3102_v10, %v2854_v6  ;;  %v1674_v41 = vadd.f32 %v1642_v53, %v1573_v35 }
 0x147   : > { %v1974_v17 = vmin.f32 %v1942_v20, 6.0  ;;  %v649_v28 = vmin.f32 %v617_v4, 6.0  ;;  %v652_v59 = vmin.f32 %v620_v61, 6.0  ;;  %v1142_v37 = vmul.f32 %v2861_v11, %v2967_v5 }
 0x148   : > { %v1773_v12 = vadd.f32 %v1741_v47, %v1673_v36  ;;  %v650_v8 = vmin.f32 %v618_v0, 6.0  ;;  %v1143_v50 = vmul.f32 %v2861_v11, %v2979_v63  ;;  %v1774_v29 = vadd.f32 %v1742_v18, %v1674_v41  ;;  %v1808_v0 = vld [vmem:[#allocation2 + $0xf1] sm:$0xff] }
 0x149   : > { %v2002_v39 = vpack.c.bf16 %v1974_v17, %v1973_v32  ;;  %v1842_v3 = vmul.f32 %v2891_v49, %v1806_v27  ;;  %682 = vst [vmem:[#allocation2 + $0x1e8] sm:$0xff] %v649_v28  ;;  %685 = vst [vmem:[#allocation2 + $0x210] sm:$0xff] %v652_v59  ;;  %v1242_v10 = vmul.f32 %v3116_v46, %v2872_v19 }
 0x14a   : > { %v1873_v22 = vadd.f32 %v1841_v58, %v1773_v12  ;;  %683 = vst [vmem:[#allocation2 + $0x1f0] sm:$0xff] %v650_v8  ;;  %v1174_v14 = vadd.f32 %v1142_v37, %v1042_v2  ;;  %v1175_v45 = vadd.f32 %v1143_v50, %v1043_v38  ;;  %v1243_v5 = vmul.f32 %v3135_v24, %v2872_v19  ;;  %v1408_v12 = vld [vmem:[#allocation2 + $0xe8] sm:$0xff]  ;;  %v1409_v8 = vld [vmem:[#allocation2 + $0xf0] sm:$0xff] }
 0x14b   : > { %2608 = vmatmul.mubr.bf16.gmra.mrb[4].mxu1 %v2002_v39  ;;  %v1874_v63 = vadd.f32 %v1842_v3, %v1774_v29  ;;  %v1342_v56 = vmul.f32 %v3147_v16, %v2884_v43  ;;  %v1343_v57 = vmul.f32 %v3153_v21, %v2884_v43  ;;  %v1442_v46 = vmul.f32 %v2878_v30, %v1406_v7 }
 0x14c   : > { %v1911_v33 = vadd.f32 %v2996_v51, %v1873_v22  ;;  %v1274_v53 = vadd.f32 %v1242_v10, %v1174_v14  ;;  %v1275_v47 = vadd.f32 %v1243_v5, %v1175_v45  ;;  %v1443_v24 = vmul.f32 %v2878_v30, %v1407_v40  ;;  %v3234_v10 = vld [vmem:[#allocation2 + $0x107] sm:$0xff]  ;;  %v3242_v5 = vld [vmem:[#allocation2 + $0x110] sm:$0xff] }
 0x14d   : > { %v1912_v13 = vadd.f32 %v2996_v51, %v1874_v63  ;;  %v1542_v18 = vmul.f32 %v3159_v23, %v2889_v48  ;;  %v1543_v58 = vmul.f32 %v1806_v27, %v2889_v48  ;;  %v1643_v15 = vmul.f32 %v2886_v44, %v3193_v55  ;;  %v3240_v45 = vld [vmem:[#allocation2 + $0x108] sm:$0xff] }
 0x14e   : > { %v1943_v52 = vmax.f32 %v1911_v33, 0.0  ;;  %v1374_v62 = vadd.f32 %v1342_v56, %v1274_v53  ;;  %v1375_v34 = vadd.f32 %v1343_v57, %v1275_v47  ;;  %v1644_v25 = vmul.f32 %v2886_v44, %v3200_v42  ;;  %v3247_v33 = vld [vmem:[#allocation2 + $0x109] sm:$0xff] }
 0x14f   : > { %v1944_v60 = vmax.f32 %v1912_v13, 0.0  ;;  %v1743_v1 = vmul.f32 %v2880_v31, %v3005_v26  ;;  %v1744_v2 = vmul.f32 %v2880_v31, %v3016_v54  ;;  %v1843_v20 = vmul.f32 %v2891_v49, %v3204_v9 }
 0x150   : > { %v1975_v35 = vmin.f32 %v1943_v52, 6.0  ;;  %v1474_v4 = vadd.f32 %v1442_v46, %v1374_v62  ;;  %v1475_v61 = vadd.f32 %v1443_v24, %v1375_v34  ;;  %v1044_v32 = vmul.f32 %v3147_v16, %v2854_v6 }
 0x151   : > { %v1976_v36 = vmin.f32 %v1944_v60, 6.0  ;;  %v1045_v38 = vmul.f32 %v3153_v21, %v2854_v6  ;;  %v1144_v17 = vmul.f32 %v1406_v7, %v2861_v11  ;;  %v1145_v26 = vmul.f32 %v1407_v40, %v2861_v11 }
 0x152   : > { %v1574_v41 = vadd.f32 %v1542_v18, %v1474_v4  ;;  %v1575_v54 = vadd.f32 %v1543_v58, %v1475_v61  ;;  %v1244_v28 = vmul.f32 %v3159_v23, %v2872_v19  ;;  %v1245_v59 = vmul.f32 %v1806_v27, %v2872_v19  ;;  %v3236_v23 = vld [vmem:[#allocation2 + $0x10f] sm:$0xff] }
 0x153   : > { %v2003_v37 = vpack.c.bf16 %v1976_v36, %v1975_v35  ;;  %v1176_v16 = vadd.f32 %v1144_v17, %v1044_v32  ;;  %v1177_v50 = vadd.f32 %v1145_v26, %v1045_v38  ;;  %v1344_v39 = vmul.f32 %v3193_v55, %v2884_v43 }
 0x154   : > { %v1675_v21 = vadd.f32 %v1643_v15, %v1574_v41  ;;  %v1676_v29 = vadd.f32 %v1644_v25, %v1575_v54  ;;  %v1844_v7 = vmul.f32 %v2891_v49, %v1808_v0  ;;  %v1345_v3 = vmul.f32 %v3200_v42, %v2884_v43  ;;  %v3257_v25 = vld [vmem:[#allocation2 + $0x111] sm:$0xff] }
 0x155   : > { %2611 = vmatprep.mubr.bf16.mxu1 %v2003_v37  ;;  %v1276_v27 = vadd.f32 %v1244_v28, %v1176_v16  ;;  %v1277_v40 = vadd.f32 %v1245_v59, %v1177_v50  ;;  %v1444_v22 = vmul.f32 %v2878_v30, %v1408_v12  ;;  %v1445_v14 = vmul.f32 %v2878_v30, %v1409_v8 }
 0x156   : > { %v1775_v63 = vadd.f32 %v1743_v1, %v1675_v21  ;;  %v1776_v56 = vadd.f32 %v1744_v2, %v1676_v29  ;;  %v1544_v57 = vmul.f32 %v3204_v9, %v2889_v48  ;;  %v1545_v46 = vmul.f32 %v1808_v0, %v2889_v48  ;;  %v3278_v29 = vld [vmem:[#allocation2 + $0x127] sm:$0xff] }
 0x157   : > { %v1376_v53 = vadd.f32 %v1344_v39, %v1276_v27  ;;  %v1377_v47 = vadd.f32 %v1345_v3, %v1277_v40  ;;  %v1645_v24 = vmul.f32 %v2886_v44, %v3234_v10  ;;  %v1646_v13 = vmul.f32 %v2886_v44, %v3236_v23 }
 0x158   : > { %v1875_v18 = vadd.f32 %v1843_v20, %v1775_v63  ;;  %v1876_v58 = vadd.f32 %v1844_v7, %v1776_v56  ;;  %v1745_v15 = vmul.f32 %v2880_v31, %v3240_v45  ;;  %v1746_v52 = vmul.f32 %v2880_v31, %v3242_v5  ;;  %v3280_v7 = vld [vmem:[#allocation2 + $0x12f] sm:$0xff] }
 0x159   : > { %v1476_v62 = vadd.f32 %v1444_v22, %v1376_v53  ;;  %v1477_v34 = vadd.f32 %v1445_v14, %v1377_v47  ;;  %v1845_v60 = vmul.f32 %v2891_v49, %v3247_v33  ;;  %v1046_v1 = vmul.f32 %v3193_v55, %v2854_v6  ;;  %v3286_v22 = vld [vmem:[#allocation2 + $0x128] sm:$0xff] }
 0x15a   : > { %v1913_v2 = vadd.f32 %v2996_v51, %v1875_v18  ;;  %v1914_v20 = vadd.f32 %v2996_v51, %v1876_v58  ;;  %v1047_v35 = vmul.f32 %v3200_v42, %v2854_v6  ;;  %v1146_v4 = vmul.f32 %v1408_v12, %v2861_v11  ;;  %v3292_v53 = vld [vmem:[#allocation2 + $0x129] sm:$0xff] }
 0x15b   : > { %v1576_v61 = vadd.f32 %v1544_v57, %v1476_v62  ;;  %v1577_v32 = vadd.f32 %v1545_v46, %v1477_v34  ;;  %v1147_v36 = vmul.f32 %v1409_v8, %v2861_v11  ;;  %v1246_v38 = vmul.f32 %v3204_v9, %v2872_v19  ;;  %v3290_v46 = vld [vmem:[#allocation2 + $0x130] sm:$0xff] }
 0x15c   : > { %v1945_v17 = vmax.f32 %v1913_v2, 0.0  ;;  %v1946_v26 = vmax.f32 %v1914_v20, 0.0  ;;  %v1846_v55 = vmul.f32 %v2891_v49, %v3257_v25  ;;  %v1178_v41 = vadd.f32 %v1146_v4, %v1046_v1 }
 0x15d   : > { %v1677_v54 = vadd.f32 %v1645_v24, %v1576_v61  ;;  %v1678_v28 = vadd.f32 %v1646_v13, %v1577_v32  ;;  %v1179_v59 = vadd.f32 %v1147_v36, %v1047_v35  ;;  %v1247_v42 = vmul.f32 %v1808_v0, %v2872_v19  ;;  %v1812_v36 = vld [vmem:[#allocation2 + $0x131] sm:$0xff] }
 0x15e   : > { %v1977_v37 = vmin.f32 %v1945_v17, 6.0  ;;  %v1978_v12 = vmin.f32 %v1946_v26, 6.0  ;;  %v1278_v16 = vadd.f32 %v1246_v38, %v1178_v41  ;;  %v1346_v8 = vmul.f32 %v3234_v10, %v2884_v43 }
 0x15f   : > { %v1777_v50 = vadd.f32 %v1745_v15, %v1677_v54  ;;  %v1778_v39 = vadd.f32 %v1746_v52, %v1678_v28  ;;  %v1279_v9 = vadd.f32 %v1247_v42, %v1179_v59  ;;  %v1347_v21 = vmul.f32 %v3236_v23, %v2884_v43 }
 0x160   : > { %v2004_v3 = vpack.c.bf16 %v1978_v12, %v1977_v37  ;;  %v1378_v27 = vadd.f32 %v1346_v8, %v1278_v16  ;;  %v1446_v0 = vmul.f32 %v3240_v45, %v2878_v30  ;;  %v1447_v40 = vmul.f32 %v3242_v5, %v2878_v30 }
 0x161   : > { %v1877_v14 = vadd.f32 %v1845_v60, %v1777_v50  ;;  %v1878_v63 = vadd.f32 %v1846_v55, %v1778_v39  ;;  %v1379_v56 = vadd.f32 %v1347_v21, %v1279_v9  ;;  %v1546_v57 = vmul.f32 %v3247_v33, %v2889_v48  ;;  %v3329_v39 = vld [vmem:[#allocation2 + $0x14f] sm:$0xff] }
 0x162   : > { %2612 = vmatmul.mubr.bf16.gmra.mrb[8].mxu1 %v2004_v3  ;;  %v1478_v47 = vadd.f32 %v1446_v0, %v1378_v27  ;;  %v1547_v24 = vmul.f32 %v3257_v25, %v2889_v48  ;;  %v1647_v13 = vmul.f32 %v2886_v44, %v3278_v29  ;;  %v1648_v18 = vmul.f32 %v2886_v44, %v3280_v7  ;;  %v3331_v9 = vld [vmem:[#allocation2 + $0x148] sm:$0xff]  ;;  %v3333_v21 = vld [vmem:[#allocation2 + $0x150] sm:$0xff] }
 0x163   : > { %v1915_v58 = vadd.f32 %v2996_v51, %v1877_v14  ;;  %v1916_v15 = vadd.f32 %v2996_v51, %v1878_v63  ;;  %v1479_v52 = vadd.f32 %v1447_v40, %v1379_v56  ;;  %v1747_v62 = vmul.f32 %v2880_v31, %v3286_v22  ;;  %v3340_v14 = vld [vmem:[#allocation2 + $0x149] sm:$0xff] }
 0x164   : > { %v1578_v34 = vadd.f32 %v1546_v57, %v1478_v47  ;;  %v1748_v60 = vmul.f32 %v2880_v31, %v3290_v46  ;;  %v1847_v1 = vmul.f32 %v2891_v49, %v3292_v53  ;;  %v1048_v2 = vmul.f32 %v3234_v10, %v2854_v6 }
 0x165   : > { %v1947_v20 = vmax.f32 %v1915_v58, 0.0  ;;  %v1948_v35 = vmax.f32 %v1916_v15, 0.0  ;;  %v1579_v4 = vadd.f32 %v1547_v24, %v1479_v52  ;;  %v1049_v61 = vmul.f32 %v3236_v23, %v2854_v6  ;;  %v3352_v15 = vld [vmem:[#allocation2 + $0x151] sm:$0xff] }
 0x166   : > { %v1679_v32 = vadd.f32 %v1647_v13, %v1578_v34  ;;  %v1148_v38 = vmul.f32 %v3240_v45, %v2861_v11  ;;  %v1149_v17 = vmul.f32 %v3242_v5, %v2861_v11  ;;  %v1248_v26 = vmul.f32 %v3247_v33, %v2872_v19  ;;  %v3325_v33 = vld [vmem:[#allocation2 + $0x147] sm:$0xff] }
 0x167   : > { %v1979_v55 = vmin.f32 %v1947_v20, 6.0  ;;  %v1980_v41 = vmin.f32 %v1948_v35, 6.0  ;;  %v1680_v10 = vadd.f32 %v1648_v18, %v1579_v4  ;;  %v1249_v54 = vmul.f32 %v3257_v25, %v2872_v19 }
 0x168   : > { %v1779_v28 = vadd.f32 %v1747_v62, %v1679_v32  ;;  %v1180_v59 = vadd.f32 %v1148_v38, %v1048_v2  ;;  %v1181_v23 = vadd.f32 %v1149_v17, %v1049_v61  ;;  %v1348_v42 = vmul.f32 %v3278_v29, %v2884_v43 }
 0x169   : > { %v2005_v37 = vpack.c.bf16 %v1980_v41, %v1979_v55  ;;  %v1780_v45 = vadd.f32 %v1748_v60, %v1680_v10  ;;  %v1848_v12 = vmul.f32 %v2891_v49, %v1812_v36  ;;  %v1349_v5 = vmul.f32 %v3280_v7, %v2884_v43 }
 0x16a   : > { %v1879_v16 = vadd.f32 %v1847_v1, %v1779_v28  ;;  %v1280_v8 = vadd.f32 %v1248_v26, %v1180_v59  ;;  %v1281_v50 = vadd.f32 %v1249_v54, %v1181_v23  ;;  %v1448_v25 = vmul.f32 %v3286_v22, %v2878_v30 }
 0x16b   : > { %2615 = vmatprep.mubr.bf16.mxu1 %v2005_v37  ;;  %v1880_v3 = vadd.f32 %v1848_v12, %v1780_v45  ;;  %v1449_v27 = vmul.f32 %v3290_v46, %v2878_v30  ;;  %v1548_v0 = vmul.f32 %v3292_v53, %v2889_v48  ;;  %v1549_v40 = vmul.f32 %v1812_v36, %v2889_v48  ;;  %v3377_v12 = vld [vmem:[#allocation2 + $0x16f] sm:$0xff] }
 0x16c   : > { %v1917_v63 = vadd.f32 %v2996_v51, %v1879_v16  ;;  %v1380_v56 = vadd.f32 %v1348_v42, %v1280_v8  ;;  %v1381_v57 = vadd.f32 %v1349_v5, %v1281_v50  ;;  %v1649_v47 = vmul.f32 %v2886_v44, %v3325_v33  ;;  %v3379_v5 = vld [vmem:[#allocation2 + $0x168] sm:$0xff] }
 0x16d   : > { %v1918_v24 = vadd.f32 %v2996_v51, %v1880_v3  ;;  %v1650_v13 = vmul.f32 %v2886_v44, %v3329_v39  ;;  %v1749_v18 = vmul.f32 %v2880_v31, %v3331_v9  ;;  %v1750_v58 = vmul.f32 %v2880_v31, %v3333_v21  ;;  %v3389_v3 = vld [vmem:[#allocation2 + $0x169] sm:$0xff] }
 0x16e   : > { %v1949_v52 = vmax.f32 %v1917_v63, 0.0  ;;  %v1480_v62 = vadd.f32 %v1448_v25, %v1380_v56  ;;  %v1481_v34 = vadd.f32 %v1449_v27, %v1381_v57  ;;  %v1849_v60 = vmul.f32 %v2891_v49, %v3340_v14 }
 0x16f   : > { %v1950_v1 = vmax.f32 %v1918_v24, 0.0  ;;  %v1050_v2 = vmul.f32 %v3278_v29, %v2854_v6  ;;  %v1051_v20 = vmul.f32 %v3280_v7, %v2854_v6  ;;  %v1150_v35 = vmul.f32 %v3286_v22, %v2861_v11 }
 0x170   : > { %v1580_v4 = vadd.f32 %v1548_v0, %v1480_v62  ;;  %v1581_v61 = vadd.f32 %v1549_v40, %v1481_v34  ;;  %v1850_v32 = vmul.f32 %v2891_v49, %v3352_v15  ;;  %v1151_v38 = vmul.f32 %v3290_v46, %v2861_v11  ;;  %v3373_v46 = vld [vmem:[#allocation2 + $0x167] sm:$0xff] }
 0x171   : > { %v1981_v17 = vmin.f32 %v1949_v52, 6.0  ;;  %v1982_v26 = vmin.f32 %v1950_v1, 6.0  ;;  %v1182_v55 = vadd.f32 %v1150_v35, %v1050_v2  ;;  %v1250_v29 = vmul.f32 %v3292_v53, %v2872_v19 }
 0x172   : > { %v1681_v41 = vadd.f32 %v1649_v47, %v1580_v4  ;;  %v1682_v10 = vadd.f32 %v1650_v13, %v1581_v61  ;;  %v1183_v7 = vadd.f32 %v1151_v38, %v1051_v20  ;;  %v1251_v54 = vmul.f32 %v1812_v36, %v2872_v19  ;;  %v3381_v36 = vld [vmem:[#allocation2 + $0x170] sm:$0xff] }
 0x173   : > { %v2006_v22 = vpack.c.bf16 %v1982_v26, %v1981_v17  ;;  %v1282_v28 = vadd.f32 %v1250_v29, %v1182_v55  ;;  %v1350_v59 = vmul.f32 %v3325_v33, %v2884_v43  ;;  %v1351_v23 = vmul.f32 %v3329_v39, %v2884_v43  ;;  %v1816_v61 = vld [vmem:[#allocation2 + $0x171] sm:$0xff] }
 0x174   : > { %v1781_v42 = vadd.f32 %v1749_v18, %v1681_v41  ;;  %v1782_v37 = vadd.f32 %v1750_v58, %v1682_v10  ;;  %v1283_v45 = vadd.f32 %v1251_v54, %v1183_v7  ;;  %v1450_v53 = vmul.f32 %v3331_v9, %v2878_v30 }
 0x175   : > { %2616 = vmatmul.mubr.bf16.gmra.mrb[12].mxu1 %v2006_v22  ;;  %v1382_v16 = vadd.f32 %v1350_v59, %v1282_v28  ;;  %v1451_v8 = vmul.f32 %v3333_v21, %v2878_v30  ;;  %v1550_v50 = vmul.f32 %v3340_v14, %v2889_v48  ;;  %v1551_v25 = vmul.f32 %v3352_v15, %v2889_v48  ;;  %v3420_v22 = vld [vmem:[#allocation2 + $0x187] sm:$0xff] }
 0x176   : > { %v1881_v27 = vadd.f32 %v1849_v60, %v1781_v42  ;;  %v1882_v0 = vadd.f32 %v1850_v32, %v1782_v37  ;;  %v1383_v40 = vadd.f32 %v1351_v23, %v1283_v45  ;;  %v1651_v63 = vmul.f32 %v2886_v44, %v3373_v46  ;;  %v3428_v37 = vld [vmem:[#allocation2 + $0x188] sm:$0xff]  ;;  %v3430_v45 = vld [vmem:[#allocation2 + $0x190] sm:$0xff] }
 0x177   : > { %v1482_v56 = vadd.f32 %v1450_v53, %v1382_v16  ;;  %v1652_v57 = vmul.f32 %v2886_v44, %v3377_v12  ;;  %v1751_v47 = vmul.f32 %v2880_v31, %v3379_v5  ;;  %v1752_v24 = vmul.f32 %v2880_v31, %v3381_v36 }
 0x178   : > { %v1919_v13 = vadd.f32 %v2996_v51, %v1881_v27  ;;  %v1920_v18 = vadd.f32 %v2996_v51, %v1882_v0  ;;  %v1483_v58 = vadd.f32 %v1451_v8, %v1383_v40  ;;  %v1851_v52 = vmul.f32 %v2891_v49, %v3389_v3  ;;  %v3440_v27 = vld [vmem:[%s3772_s4] ss:$0 sm:$0xff] }
 0x179   : > { %v1582_v62 = vadd.f32 %v1550_v50, %v1482_v56  ;;  %v1052_v34 = vmul.f32 %v3325_v33, %v2854_v6  ;;  %v1053_v60 = vmul.f32 %v3329_v39, %v2854_v6  ;;  %v1152_v1 = vmul.f32 %v3331_v9, %v2861_v11 }
 0x17a   : > { %v1951_v2 = vmax.f32 %v1919_v13, 0.0  ;;  %v1952_v20 = vmax.f32 %v1920_v18, 0.0  ;;  %v1583_v35 = vadd.f32 %v1551_v25, %v1483_v58  ;;  %v1153_v51 = vmul.f32 %v3333_v21, %v2861_v11  ;;  %v3435_v25 = vld [vmem:[#allocation2 + $0x189] sm:$0xff]  ;;  %v3452_v18 = vld [vmem:[#allocation2 + $0x191] sm:$0xff] }
 0x17b   : > { %v1683_v4 = vadd.f32 %v1651_v63, %v1582_v62  ;;  %v1184_v32 = vadd.f32 %v1152_v1, %v1052_v34  ;;  %v1252_v38 = vmul.f32 %v3340_v14, %v2872_v19  ;;  %v1253_v33 = vmul.f32 %v3352_v15, %v2872_v19  ;;  %v3422_v15 = vld [vmem:[#allocation2 + $0x18f] sm:$0xff] }
 0x17c   : > { %v1983_v17 = vmin.f32 %v1951_v2, 6.0  ;;  %v1984_v39 = vmin.f32 %v1952_v20, 6.0  ;;  %v1684_v26 = vadd.f32 %v1652_v57, %v1583_v35  ;;  %v1185_v55 = vadd.f32 %v1153_v51, %v1053_v60 }
 0x17d   : > { %v1783_v9 = vadd.f32 %v1751_v47, %v1683_v4  ;;  %v1284_v29 = vadd.f32 %v1252_v38, %v1184_v32  ;;  %v1352_v41 = vmul.f32 %v3373_v46, %v2884_v43  ;;  %v1353_v21 = vmul.f32 %v3377_v12, %v2884_v43 }
 0x17e   : > { %v2007_v10 = vpack.c.bf16 %v1984_v39, %v1983_v17  ;;  %v1784_v7 = vadd.f32 %v1752_v24, %v1684_v26  ;;  %v1852_v54 = vmul.f32 %v2891_v49, %v1816_v61  ;;  %v1285_v14 = vadd.f32 %v1253_v33, %v1185_v55 }
 0x17f   : > { %v1883_v28 = vadd.f32 %v1851_v52, %v1783_v9  ;;  %v1384_v59 = vadd.f32 %v1352_v41, %v1284_v29  ;;  %v1452_v23 = vmul.f32 %v3379_v5, %v2878_v30  ;;  %v1453_v42 = vmul.f32 %v3381_v36, %v2878_v30  ;;  %v3473_v41 = vld [vmem:[#allocation2 + $0x1a7] sm:$0xff] }
 0x180   : > { %2619 = vmatprep.mubr.bf16.mxu1 %v2007_v10  ;;  %v1884_v53 = vadd.f32 %v1852_v54, %v1784_v7  ;;  %v1385_v16 = vadd.f32 %v1353_v21, %v1285_v14  ;;  %v1552_v8 = vmul.f32 %v3389_v3, %v2889_v48  ;;  %v1553_v50 = vmul.f32 %v1816_v61, %v2889_v48  ;;  %v3481_v54 = vld [vmem:[#allocation2 + $0x1a8] sm:$0xff]  ;;  %v3483_v14 = vld [vmem:[#allocation2 + $0x1b0] sm:$0xff] }
 0x181   : > { %v1921_v0 = vadd.f32 %v3440_v27, %v1883_v28  ;;  %v1484_v40 = vadd.f32 %v1452_v23, %v1384_v59  ;;  %v1653_v63 = vmul.f32 %v2886_v44, %v3420_v22  ;;  %v1654_v56 = vmul.f32 %v2886_v44, %v3422_v15 }
 0x182   : > { %v1922_v57 = vadd.f32 %v3440_v27, %v1884_v53  ;;  %v1485_v47 = vadd.f32 %v1453_v42, %v1385_v16  ;;  %v1753_v24 = vmul.f32 %v2880_v31, %v3428_v37  ;;  %v1754_v13 = vmul.f32 %v2880_v31, %v3430_v45  ;;  %v3489_v53 = vld [vmem:[#allocation2 + $0x1a9] sm:$0xff] }
 0x183   : > { %v1953_v58 = vmax.f32 %v1921_v0, 0.0  ;;  %v1584_v52 = vadd.f32 %v1552_v8, %v1484_v40  ;;  %v1853_v62 = vmul.f32 %v2891_v49, %v3435_v25  ;;  %v1054_v34 = vmul.f32 %v3373_v46, %v2854_v6 }
 0x184   : > { %v1954_v60 = vmax.f32 %v1922_v57, 0.0  ;;  %v1585_v1 = vadd.f32 %v1553_v50, %v1485_v47  ;;  %v1055_v2 = vmul.f32 %v3377_v12, %v2854_v6  ;;  %v1154_v20 = vmul.f32 %v3379_v5, %v2861_v11 }
 0x185   : > { %v1685_v35 = vadd.f32 %v1653_v63, %v1584_v52  ;;  %v1854_v51 = vmul.f32 %v2891_v49, %v3452_v18  ;;  %v1155_v4 = vmul.f32 %v3381_v36, %v2861_v11  ;;  %v1254_v32 = vmul.f32 %v3389_v3, %v2872_v19  ;;  %v3475_v3 = vld [vmem:[#allocation2 + $0x1af] sm:$0xff] }
 0x186   : > { %v1985_v38 = vmin.f32 %v1953_v58, 6.0  ;;  %v1986_v46 = vmin.f32 %v1954_v60, 6.0  ;;  %v1686_v33 = vadd.f32 %v1654_v56, %v1585_v1  ;;  %v1186_v17 = vadd.f32 %v1154_v20, %v1054_v34  ;;  %v1820_v20 = vld [vmem:[#allocation2 + $0x1b1] sm:$0xff] }
 0x187   : > { %v1785_v39 = vadd.f32 %v1753_v24, %v1685_v35  ;;  %v1187_v26 = vadd.f32 %v1155_v4, %v1055_v2  ;;  %v1255_v12 = vmul.f32 %v1816_v61, %v2872_v19  ;;  %v1354_v5 = vmul.f32 %v3420_v22, %v2884_v43 }
 0x188   : > { %v2008_v55 = vpack.c.bf16 %v1986_v46, %v1985_v38  ;;  %v1786_v9 = vadd.f32 %v1754_v13, %v1686_v33  ;;  %v1286_v29 = vadd.f32 %v1254_v32, %v1186_v17  ;;  %v1355_v36 = vmul.f32 %v3422_v15, %v2884_v43 }
 0x189   : > { %v1885_v21 = vadd.f32 %v1853_v62, %v1785_v39  ;;  %v1287_v10 = vadd.f32 %v1255_v12, %v1187_v26  ;;  %v1454_v7 = vmul.f32 %v3428_v37, %v2878_v30  ;;  %v1455_v61 = vmul.f32 %v3430_v45, %v2878_v30  ;;  %v3522_v12 = vld [vmem:[#allocation2 + $0x1cf] sm:$0xff] }
 0x18a   : > { %2620 = vmatmul.mubr.bf16.gmra.mrb[16].mxu1 %v2008_v55  ;;  %v1886_v28 = vadd.f32 %v1854_v51, %v1786_v9  ;;  %v1386_v59 = vadd.f32 %v1354_v5, %v1286_v29  ;;  %v1554_v23 = vmul.f32 %v3435_v25, %v2889_v48  ;;  %v1555_v42 = vmul.f32 %v3452_v18, %v2889_v48  ;;  %v3528_v29 = vld [vmem:[#allocation2 + $0x1c8] sm:$0xff] }
 0x18b   : > { %v1923_v16 = vadd.f32 %v3440_v27, %v1885_v21  ;;  %v1387_v8 = vadd.f32 %v1355_v36, %v1287_v10  ;;  %v1655_v50 = vmul.f32 %v2886_v44, %v3473_v41  ;;  %v1656_v0 = vmul.f32 %v2886_v44, %v3475_v3  ;;  %v3530_v36 = vld [vmem:[#allocation2 + $0x1d0] sm:$0xff] }
 0x18c   : > { %v1924_v40 = vadd.f32 %v3440_v27, %v1886_v28  ;;  %v1486_v63 = vadd.f32 %v1454_v7, %v1386_v59  ;;  %v1755_v56 = vmul.f32 %v2880_v31, %v3481_v54  ;;  %v1756_v57 = vmul.f32 %v2880_v31, %v3483_v14  ;;  %v3535_v28 = vld [vmem:[#allocation2 + $0x1c9] sm:$0xff] }
 0x18d   : > { %v1955_v47 = vmax.f32 %v1923_v16, 0.0  ;;  %v1487_v24 = vadd.f32 %v1455_v61, %v1387_v8  ;;  %v1855_v13 = vmul.f32 %v2891_v49, %v3489_v53  ;;  %v1056_v58 = vmul.f32 %v3420_v22, %v2854_v6 }
 0x18e   : > { %v1956_v52 = vmax.f32 %v1924_v40, 0.0  ;;  %v1586_v62 = vadd.f32 %v1554_v23, %v1486_v63  ;;  %v1057_v34 = vmul.f32 %v3422_v15, %v2854_v6  ;;  %v1156_v60 = vmul.f32 %v3428_v37, %v2861_v11 }
 0x18f   : > { %v1987_v1 = vmin.f32 %v1955_v47, 6.0  ;;  %v1587_v2 = vadd.f32 %v1555_v42, %v1487_v24  ;;  %v1157_v35 = vmul.f32 %v3430_v45, %v2861_v11  ;;  %v1256_v51 = vmul.f32 %v3435_v25, %v2872_v19  ;;  %v3520_v25 = vld [vmem:[#allocation2 + $0x1c7] sm:$0xff] }
 0x190   : > { %v1988_v4 = vmin.f32 %v1956_v52, 6.0  ;;  %v1687_v32 = vadd.f32 %v1655_v50, %v1586_v62  ;;  %v1188_v22 = vadd.f32 %v1156_v60, %v1056_v58  ;;  %v1257_v38 = vmul.f32 %v3452_v18, %v2872_v19 }
 0x191   : > { %v1688_v46 = vadd.f32 %v1656_v0, %v1587_v2  ;;  %v1189_v15 = vadd.f32 %v1157_v35, %v1057_v34  ;;  %v1356_v37 = vmul.f32 %v3473_v41, %v2884_v43  ;;  %v1357_v33 = vmul.f32 %v3475_v3, %v2884_v43 }
 0x192   : > { %v2009_v17 = vpack.c.bf16 %v1988_v4, %v1987_v1  ;;  %v1787_v39 = vadd.f32 %v1755_v56, %v1687_v32  ;;  %v1856_v45 = vmul.f32 %v2891_v49, %v1820_v20  ;;  %v1288_v26 = vadd.f32 %v1256_v51, %v1188_v22 }
 0x193   : > { %v1788_v5 = vadd.f32 %v1756_v57, %v1688_v46  ;;  %v1289_v55 = vadd.f32 %v1257_v38, %v1189_v15  ;;  %v1456_v18 = vmul.f32 %v3481_v54, %v2878_v30  ;;  %v1457_v9 = vmul.f32 %v3483_v14, %v2878_v30  ;;  %v1822_v57 = vld [vmem:[#allocation2 + $0x1d1] sm:$0xff] }
 0x194   : > { %2623 = vmatprep.mubr.bf16.mxu1 %v2009_v17  ;;  %v1887_v21 = vadd.f32 %v1855_v13, %v1787_v39  ;;  %v1388_v10 = vadd.f32 %v1356_v37, %v1288_v26  ;;  %v1556_v7 = vmul.f32 %v3489_v53, %v2889_v48  ;;  %v1557_v61 = vmul.f32 %v1820_v20, %v2889_v48  ;;  %v3565_v37 = vld [vmem:[#allocation2 + $0x1e7] sm:$0xff] }
 0x195   : > { %v1888_v59 = vadd.f32 %v1856_v45, %v1788_v5  ;;  %v1389_v23 = vadd.f32 %v1357_v33, %v1289_v55  ;;  %v1657_v42 = vmul.f32 %v2886_v44, %v3520_v25  ;;  %v1658_v16 = vmul.f32 %v2886_v44, %v3522_v12  ;;  %v3569_v45 = vld [vmem:[#allocation2 + $0x1ef] sm:$0xff] }
 0x196   : > { %v1925_v8 = vadd.f32 %v3440_v27, %v1887_v21  ;;  %v1488_v50 = vadd.f32 %v1456_v18, %v1388_v10  ;;  %v1757_v0 = vmul.f32 %v2880_v31, %v3528_v29  ;;  %v1758_v40 = vmul.f32 %v2880_v31, %v3530_v36  ;;  %v3571_v26 = vld [vmem:[#allocation2 + $0x1e8] sm:$0xff] }
 0x197   : > { %v1926_v63 = vadd.f32 %v3440_v27, %v1888_v59  ;;  %v1489_v56 = vadd.f32 %v1457_v9, %v1389_v23  ;;  %v1857_v47 = vmul.f32 %v2891_v49, %v3535_v28  ;;  %v1058_v24 = vmul.f32 %v3473_v41, %v2854_v6  ;;  %v3577_v9 = vld [vmem:[#allocation2 + $0x1f0] sm:$0xff] }
 0x198   : > { %v1957_v13 = vmax.f32 %v1925_v8, 0.0  ;;  %v1588_v58 = vadd.f32 %v1556_v7, %v1488_v50  ;;  %v1059_v52 = vmul.f32 %v3475_v3, %v2854_v6  ;;  %v1158_v62 = vmul.f32 %v3481_v54, %v2861_v11  ;;  %v3579_v21 = vld [vmem:[#allocation2 + $0x1e9] sm:$0xff] }
 0x199   : > { %v1958_v34 = vmax.f32 %v1926_v63, 0.0  ;;  %v1589_v60 = vadd.f32 %v1557_v61, %v1489_v56  ;;  %v1159_v1 = vmul.f32 %v3483_v14, %v2861_v11  ;;  %v1258_v2 = vmul.f32 %v3489_v53, %v2872_v19 }
 0x19a   : > { %v1989_v35 = vmin.f32 %v1957_v13, 6.0  ;;  %v1689_v51 = vadd.f32 %v1657_v42, %v1588_v58  ;;  %v1858_v41 = vmul.f32 %v2891_v49, %v1822_v57  ;;  %v1190_v4 = vadd.f32 %v1158_v62, %v1058_v24  ;;  %v1824_v62 = vld [vmem:[#allocation2 + $0x1f1] sm:$0xff] }
 0x19b   : > { %v1990_v32 = vmin.f32 %v1958_v34, 6.0  ;;  %v1690_v22 = vadd.f32 %v1658_v16, %v1589_v60  ;;  %v1191_v38 = vadd.f32 %v1159_v1, %v1059_v52  ;;  %v1259_v3 = vmul.f32 %v1820_v20, %v2872_v19 }
 0x19c   : > { %v1789_v46 = vadd.f32 %v1757_v0, %v1689_v51  ;;  %v1290_v54 = vadd.f32 %v1258_v2, %v1190_v4  ;;  %v1358_v15 = vmul.f32 %v3520_v25, %v2884_v43  ;;  %v1359_v14 = vmul.f32 %v3522_v12, %v2884_v43 }
 0x19d   : > { %v2010_v53 = vpack.c.bf16 %v1990_v32, %v1989_v35  ;;  %v1790_v33 = vadd.f32 %v1758_v40, %v1690_v22  ;;  %v1291_v17 = vadd.f32 %v1259_v3, %v1191_v38  ;;  %v1458_v39 = vmul.f32 %v3528_v29, %v2878_v30 }
 0x19e   : > { %v1889_v20 = vadd.f32 %v1857_v47, %v1789_v46  ;;  %v1390_v5 = vadd.f32 %v1358_v15, %v1290_v54  ;;  %v1459_v55 = vmul.f32 %v3530_v36, %v2878_v30  ;;  %v1558_v18 = vmul.f32 %v3535_v28, %v2889_v48  ;;  %v1626_v15 = vld [vmem:[#allocation2 + $0x20f] sm:$0xff] }
 0x19f   : > { %2624 = vmatmul.mubr.bf16.gmra.mrb[20].mxu1 %v2010_v53  ;;  %v1890_v10 = vadd.f32 %v1858_v41, %v1790_v33  ;;  %v1391_v7 = vadd.f32 %v1359_v14, %v1291_v17  ;;  %v1559_v61 = vmul.f32 %v1822_v57, %v2889_v48  ;;  %v1659_v59 = vmul.f32 %v2886_v44, %v3565_v37  ;;  %v1725_v33 = vld [vmem:[#allocation2 + $0x208] sm:$0xff] }
 0x1a0   : > { %v1927_v23 = vadd.f32 %v3440_v27, %v1889_v20  ;;  %v1490_v42 = vadd.f32 %v1458_v39, %v1390_v5  ;;  %v1660_v16 = vmul.f32 %v2886_v44, %v3569_v45  ;;  %v1759_v8 = vmul.f32 %v2880_v31, %v3571_v26 }
 0x1a1   : > { %v1928_v50 = vadd.f32 %v3440_v27, %v1890_v10  ;;  %v1491_v0 = vadd.f32 %v1459_v55, %v1391_v7  ;;  %v1760_v40 = vmul.f32 %v2880_v31, %v3577_v9  ;;  %v1859_v63 = vmul.f32 %v2891_v49, %v3579_v21  ;;  %v1726_v55 = vld [vmem:[#allocation2 + $0x210] sm:$0xff] }
 0x1a2   : > { %v1959_v56 = vmax.f32 %v1927_v23, 0.0  ;;  %v1590_v47 = vadd.f32 %v1558_v18, %v1490_v42  ;;  %v1060_v24 = vmul.f32 %v3520_v25, %v2854_v6  ;;  %v1061_v13 = vmul.f32 %v3522_v12, %v2854_v6 }
 0x1a3   : > { %v1960_v58 = vmax.f32 %v1928_v50, 0.0  ;;  %v1591_v52 = vadd.f32 %v1559_v61, %v1491_v0  ;;  %v1160_v34 = vmul.f32 %v3528_v29, %v2861_v11  ;;  %v1161_v60 = vmul.f32 %v3530_v36, %v2861_v11 }
 0x1a4   : > { %v1991_v1 = vmin.f32 %v1959_v56, 6.0  ;;  %v1691_v2 = vadd.f32 %v1659_v59, %v1590_v47  ;;  %v1260_v35 = vmul.f32 %v3535_v28, %v2872_v19  ;;  %v1261_v51 = vmul.f32 %v1822_v57, %v2872_v19  ;;  %v1625_v28 = vld [vmem:[#allocation2 + $0x207] sm:$0xff] }
 0x1a5   : > { %v1992_v25 = vmin.f32 %v1960_v58, 6.0  ;;  %v1692_v41 = vadd.f32 %v1660_v16, %v1591_v52  ;;  %v1192_v4 = vadd.f32 %v1160_v34, %v1060_v24  ;;  %v1193_v12 = vadd.f32 %v1161_v60, %v1061_v13  ;;  %v1826_v13 = vld [vmem:[#allocation2 + $0x211] sm:$0xff] }
 0x1a6   : > { %v1791_v32 = vadd.f32 %v1759_v8, %v1691_v2  ;;  %v1860_v22 = vmul.f32 %v2891_v49, %v1824_v62  ;;  %v1360_v29 = vmul.f32 %v3565_v37, %v2884_v43  ;;  %v1361_v36 = vmul.f32 %v3569_v45, %v2884_v43  ;;  %v1825_v8 = vld [vmem:[#allocation2 + $0x209] sm:$0xff] }
 0x1a7   : > { %v2011_v38 = vpack.c.bf16 %v1992_v25, %v1991_v1  ;;  %v1792_v3 = vadd.f32 %v1760_v40, %v1692_v41  ;;  %v1292_v46 = vadd.f32 %v1260_v35, %v1192_v4  ;;  %v1293_v54 = vadd.f32 %v1261_v51, %v1193_v12 }
 0x1a8   : > { %v1891_v57 = vadd.f32 %v1859_v63, %v1791_v32  ;;  %v1460_v14 = vmul.f32 %v3571_v26, %v2878_v30  ;;  %v1461_v53 = vmul.f32 %v3577_v9, %v2878_v30  ;;  %v1560_v5 = vmul.f32 %v3579_v21, %v2889_v48 }
 0x1a9   : > { %2627 = vmatprep.mubr.bf16.mxu1 %v2011_v38  ;;  %v1892_v17 = vadd.f32 %v1860_v22, %v1792_v3  ;;  %v1392_v39 = vadd.f32 %v1360_v29, %v1292_v46  ;;  %v1393_v20 = vadd.f32 %v1361_v36, %v1293_v54  ;;  %v1561_v10 = vmul.f32 %v1824_v62, %v2889_v48  ;;  %v1628_v3 = vld [vmem:[#allocation2 + $0x22f] sm:$0xff] }
 0x1aa   : > { %v1929_v18 = vadd.f32 %v3440_v27, %v1891_v57  ;;  %v1661_v7 = vmul.f32 %v2886_v44, %v1625_v28  ;;  %v1662_v61 = vmul.f32 %v2886_v44, %v1626_v15  ;;  %v1761_v16 = vmul.f32 %v2880_v31, %v1725_v33 }
 0x1ab   : > { %v1930_v59 = vadd.f32 %v3440_v27, %v1892_v17  ;;  %v1492_v23 = vadd.f32 %v1460_v14, %v1392_v39  ;;  %v1493_v42 = vadd.f32 %v1461_v53, %v1393_v20  ;;  %v1762_v0 = vmul.f32 %v2880_v31, %v1726_v55  ;;  %v1827_v17 = vld [vmem:[#allocation2 + $0x229] sm:$0xff] }
 0x1ac   : > { %v1961_v50 = vmax.f32 %v1929_v18, 0.0  ;;  %v1062_v40 = vmul.f32 %v3565_v37, %v2854_v6  ;;  %v1063_v63 = vmul.f32 %v3569_v45, %v2854_v6  ;;  %v1162_v58 = vmul.f32 %v3571_v26, %v2861_v11 }
 0x1ad   : > { %v1962_v56 = vmax.f32 %v1930_v59, 0.0  ;;  %v1592_v47 = vadd.f32 %v1560_v5, %v1492_v23  ;;  %v1593_v24 = vadd.f32 %v1561_v10, %v1493_v42  ;;  %v1861_v34 = vmul.f32 %v2891_v49, %v1825_v8  ;;  %v2677_v5 = vld [vmem:[#allocation2 + $0x8] sm:$0xff] }
 0x1ae   : > { %v1993_v52 = vmin.f32 %v1961_v50, 6.0  ;;  %v1163_v60 = vmul.f32 %v3577_v9, %v2861_v11  ;;  %v1262_v1 = vmul.f32 %v3579_v21, %v2872_v19  ;;  %v1194_v6 = vadd.f32 %v1162_v58, %v1062_v40  ;;  %v1627_v9 = vld [vmem:[#allocation2 + $0x227] sm:$0xff]  ;;  %v2248_v58 = vld [vmem:[%s2778_s14 + $0x10] sm:$0xff] }
 0x1af   : > { %v1994_v37 = vmin.f32 %v1962_v56, 6.0  ;;  %v1693_v2 = vadd.f32 %v1661_v7, %v1592_v47  ;;  %v1694_v35 = vadd.f32 %v1662_v61, %v1593_v24  ;;  %v1862_v45 = vmul.f32 %v2891_v49, %v1826_v13  ;;  %v3654_v24 = vld [vmem:[%s3774_s6] ss:$0 sm:$0xff] }
 0x1b0   : > { %v1195_v51 = vadd.f32 %v1163_v60, %v1063_v63  ;;  %v1263_v25 = vmul.f32 %v1824_v62, %v2872_v19  ;;  %v1362_v26 = vmul.f32 %v1625_v28, %v2884_v43  ;;  %v1294_v32 = vadd.f32 %v1262_v1, %v1194_v6  ;;  %v2246_v60 = vld [vmem:[%s2778_s14] sm:$0xff] }
 0x1b1   : > { %v2012_v41 = vpack.c.bf16 %v1994_v37, %v1993_v52  ;;  %v1793_v4 = vadd.f32 %v1761_v16, %v1693_v2  ;;  %v1794_v12 = vadd.f32 %v1762_v0, %v1694_v35  ;;  %v1363_v11 = vmul.f32 %v1626_v15, %v2884_v43  ;;  %v2249_v37 = vld [vmem:[%s2778_s14 + $0x18] sm:$0xff] }
 0x1b2   : > { %v1295_v22 = vadd.f32 %v1263_v25, %v1195_v51  ;;  %v1394_v36 = vadd.f32 %v1362_v26, %v1294_v32  ;;  %v1462_v38 = vmul.f32 %v1725_v33, %v2878_v30  ;;  %v1463_v19 = vmul.f32 %v1726_v55, %v2878_v30  ;;  %v1828_v55 = vld [vmem:[#allocation2 + $0x231] sm:$0xff] }
 0x1b3   : > { %2628 = vmatmul.mubr.bf16.gmra.mrb[24].mxu1 %v2012_v41  ;;  %v1893_v21 = vadd.f32 %v1861_v34, %v1793_v4  ;;  %v1894_v29 = vadd.f32 %v1862_v45, %v1794_v12  ;;  %v1562_v62 = vmul.f32 %v1825_v8, %v2889_v48  ;;  %v1663_v43 = vmul.f32 %v2886_v44, %v1627_v9  ;;  %v2247_v45 = vld [vmem:[%s2778_s14 + $0x8] sm:$0xff]  ;;  %v2252_v12 = vld [vmem:[%s2778_s14 + $0x30] sm:$0xff] }
 0x1b4   : > { %v1395_v46 = vadd.f32 %v1363_v11, %v1295_v22  ;;  %v1494_v57 = vadd.f32 %v1462_v38, %v1394_v36  ;;  %v1563_v14 = vmul.f32 %v1826_v13, %v2889_v48  ;;  %v1664_v53 = vmul.f32 %v2886_v44, %v1628_v3  ;;  %v2250_v11 = vld [vmem:[%s2778_s14 + $0x20] sm:$0xff] }
 0x1b5   : > { %v1931_v54 = vadd.f32 %v3440_v27, %v1893_v21  ;;  %v1932_v28 = vadd.f32 %v3440_v27, %v1894_v29  ;;  %v1763_v30 = vmul.f32 %v2677_v5, %v2880_v31  ;;  %v1863_v59 = vmul.f32 %v2891_v49, %v1827_v17  ;;  %v2253_v29 = vld [vmem:[%s2778_s14 + $0x38] sm:$0xff] }
 0x1b6   : > { %v1495_v15 = vadd.f32 %v1463_v19, %v1395_v46  ;;  %v1594_v20 = vadd.f32 %v1562_v62, %v1494_v57  ;;  %v1864_v42 = vmul.f32 %v2891_v49, %v1828_v55  ;;  %v2251_v46 = vld [vmem:[%s2778_s14 + $0x28] sm:$0xff] }
 0x1b7   : > { %v1963_v33 = vmax.f32 %v1931_v54, 0.0  ;;  %v1964_v39 = vmax.f32 %v1932_v28, 0.0  ;;  %v2255_v55 = vld [vmem:[%s2778_s14 + $0x48] sm:$0xff] }
 0x1b8   : > { %v1595_v18 = vadd.f32 %v1563_v14, %v1495_v15  ;;  %v1695_v61 = vadd.f32 %v1663_v43, %v1594_v20  ;;  %v2256_v43 = vld [vmem:[%s2778_s14 + $0x50] sm:$0xff] }
 0x1b9   : > { %v1995_v10 = vmin.f32 %v1963_v33, 6.0  ;;  %v1996_v7 = vmin.f32 %v1964_v39, 6.0  ;;  %v2257_v39 = vld [vmem:[%s2778_s14 + $0x58] sm:$0xff] }
 0x1ba   : > { %v1696_v23 = vadd.f32 %v1664_v53, %v1595_v18  ;;  %v1795_v44 = vadd.f32 %v1763_v30, %v1695_v61  ;;  %v2254_v53 = vld [vmem:[%s2778_s14 + $0x40] sm:$0xff] }
 0x1bb   : > { %v2013_v48 = vpack.c.bf16 %v1996_v7, %v1995_v10 }
 0x1bc   : > { %v1796_v16 = vadd.f32 %v1763_v30, %v1696_v23  ;;  %v1895_v8 = vadd.f32 %v1863_v59, %v1795_v44  ;;  %v2260_v23 = vld [vmem:[%s2778_s14 + $0x70] sm:$0xff]  ;;  %v2258_v44 = vld [vmem:[%s2778_s14 + $0x60] sm:$0xff] }
 0x1bd   : > { %2631 = vmatprep.mubr.bf16.mxu1 %v2013_v48 }
 0x1be   : > { %v1896_v50 = vadd.f32 %v1864_v42, %v1796_v16  ;;  %v1933_v31 = vadd.f32 %v3440_v27, %v1895_v8 }
 0x1c0   : > { %v1934_v0 = vadd.f32 %v3440_v27, %v1896_v50  ;;  %v1965_v40 = vmax.f32 %v1933_v31, 0.0  ;;  %v2261_v50 = vld [vmem:[%s2778_s14 + $0x78] sm:$0xff] }
 0x1c2   : > { %v1966_v63 = vmax.f32 %v1934_v0, 0.0  ;;  %v1997_v56 = vmin.f32 %v1965_v40, 6.0 }
 0x1c4   : > { %v1998_v47 = vmin.f32 %v1966_v63, 6.0  ;;  %v2259_v63 = vld [vmem:[%s2778_s14 + $0x68] sm:$0xff] }
 0x1c6   : > { %v2014_v49 = vpack.c.bf16 %v1998_v47, %v1997_v56 }
 0x1c8   : > { %2632 = vmatmul.mubr.bf16.gmra.mrb[28].mxu1 %v2014_v49 }
 0x1fd   : > { %v2605_v13 = vpop.f32.mrb[0].mxu1 }
 0x1fe   : > { %v2128_v52 = vadd.f32 %v2605_v13, %v3654_v24  ;;  %v2119_v34 = vpop.f32.mrb[1].mxu1 }
 0x1ff   : > { %v2120_v27 = vadd.f32 %v3654_v24, %v2119_v34  ;;  %v2606_v1 = vpop.f32.mrb[2].mxu1 }
 0x200   : > { %v2280_v2 = vadd.f32 %v2248_v58, %v2128_v52  ;;  %v2131_v35 = vadd.f32 %v2606_v1, %v3654_v24  ;;  %v2122_v6 = vpop.f32.mrb[3].mxu1  ;;  %v2264_v52 = vld [vmem:[%s2778_s14 + $0x90] sm:$0xff] }
 0x201   : > { %v2278_v51 = vadd.f32 %v2246_v60, %v2120_v27  ;;  %v2123_v25 = vadd.f32 %v3654_v24, %v2122_v6  ;;  %v2262_v27 = vld [vmem:[%s2778_s14 + $0x80] sm:$0xff] }
 0x202   : > { %2312 = vst [vmem:[%s3664_s23 + $0x10] sm:$0xff] %v2280_v2  ;;  %v2281_v26 = vadd.f32 %v2249_v37, %v2131_v35  ;;  %v2265_v2 = vld [vmem:[%s2778_s14 + $0x98] sm:$0xff] }
 0x203   : > { %2310 = vst [vmem:[%s3664_s23] sm:$0xff] %v2278_v51  ;;  %v2279_v41 = vadd.f32 %v2247_v45, %v2123_v25  ;;  %v2263_v51 = vld [vmem:[%s2778_s14 + $0x88] sm:$0xff] }
 0x204   : > { %2313 = vst [vmem:[%s3664_s23 + $0x18] sm:$0xff] %v2281_v26 }
 0x205   : > { %2311 = vst [vmem:[%s3664_s23 + $0x8] sm:$0xff] %v2279_v41 }
 0x21e   : > { %v2609_v4 = vpop.f32.mrb[4].mxu1 }
 0x21f   : > { %v2144_v32 = vadd.f32 %v2609_v4, %v3654_v24  ;;  %v2135_v22 = vpop.f32.mrb[5].mxu1 }
 0x220   : > { %v2136_v9 = vadd.f32 %v3654_v24, %v2135_v22  ;;  %v2610_v21 = vpop.f32.mrb[6].mxu1 }
 0x221   : > { %v2284_v36 = vadd.f32 %v2252_v12, %v2144_v32  ;;  %v2147_v38 = vadd.f32 %v2610_v21, %v3654_v24  ;;  %v2138_v3 = vpop.f32.mrb[7].mxu1  ;;  %v2268_v32 = vld [vmem:[%s2778_s14 + $0xb0] sm:$0xff] }
 0x222   : > { %v2282_v19 = vadd.f32 %v2250_v11, %v2136_v9  ;;  %v2139_v62 = vadd.f32 %v3654_v24, %v2138_v3  ;;  %v2266_v9 = vld [vmem:[%s2778_s14 + $0xa0] sm:$0xff] }
 0x223   : > { %2316 = vst [vmem:[%s3664_s23 + $0x30] sm:$0xff] %v2284_v36  ;;  %v2285_v54 = vadd.f32 %v2253_v29, %v2147_v38  ;;  %v2269_v36 = vld [vmem:[%s2778_s14 + $0xb8] sm:$0xff] }
 0x224   : > { %2314 = vst [vmem:[%s3664_s23 + $0x20] sm:$0xff] %v2282_v19  ;;  %v2283_v28 = vadd.f32 %v2251_v46, %v2139_v62  ;;  %v2267_v19 = vld [vmem:[%s2778_s14 + $0xa8] sm:$0xff] }
 0x225   : > { %2317 = vst [vmem:[%s3664_s23 + $0x38] sm:$0xff] %v2285_v54 }
 0x226   : > { %2315 = vst [vmem:[%s3664_s23 + $0x28] sm:$0xff] %v2283_v28 }
 0x235   : > { %v2613_v57 = vpop.f32.mrb[8].mxu1 }
 0x236   : > { %v2160_v15 = vadd.f32 %v2613_v57, %v3654_v24  ;;  %v2151_v14 = vpop.f32.mrb[9].mxu1 }
 0x237   : > { %v2152_v17 = vadd.f32 %v3654_v24, %v2151_v14  ;;  %v2614_v33 = vpop.f32.mrb[10].mxu1 }
 0x238   : > { %v2288_v20 = vadd.f32 %v2256_v43, %v2160_v15  ;;  %v2163_v5 = vadd.f32 %v2614_v33, %v3654_v24  ;;  %v2154_v30 = vpop.f32.mrb[11].mxu1  ;;  %v2272_v15 = vld [vmem:[%s2778_s14 + $0xd0] sm:$0xff] }
 0x239   : > { %v2286_v18 = vadd.f32 %v2254_v53, %v2152_v17  ;;  %v2155_v10 = vadd.f32 %v3654_v24, %v2154_v30  ;;  %v2270_v17 = vld [vmem:[%s2778_s14 + $0xc0] sm:$0xff] }
 0x23a   : > { %2320 = vst [vmem:[%s3664_s23 + $0x50] sm:$0xff] %v2288_v20  ;;  %v2289_v7 = vadd.f32 %v2257_v39, %v2163_v5  ;;  %v2273_v20 = vld [vmem:[%s2778_s14 + $0xd8] sm:$0xff] }
 0x23b   : > { %2318 = vst [vmem:[%s3664_s23 + $0x40] sm:$0xff] %v2286_v18  ;;  %v2287_v61 = vadd.f32 %v2255_v55, %v2155_v10  ;;  %v2271_v18 = vld [vmem:[%s2778_s14 + $0xc8] sm:$0xff] }
 0x23c   : > { %2321 = vst [vmem:[%s3664_s23 + $0x58] sm:$0xff] %v2289_v7 }
 0x23d   : > { %2319 = vst [vmem:[%s3664_s23 + $0x48] sm:$0xff] %v2287_v61 }
 0x248   : > { %v2617_v59 = vpop.f32.mrb[12].mxu1 }
 0x249   : > { %v2176_v42 = vadd.f32 %v2617_v59, %v3654_v24  ;;  %v2167_v48 = vpop.f32.mrb[13].mxu1 }
 0x24a   : > { %v2168_v16 = vadd.f32 %v3654_v24, %v2167_v48  ;;  %v2618_v8 = vpop.f32.mrb[14].mxu1 }
 0x24b   : > { %v2292_v31 = vadd.f32 %v2260_v23, %v2176_v42  ;;  %v2179_v0 = vadd.f32 %v2618_v8, %v3654_v24  ;;  %v2170_v40 = vpop.f32.mrb[15].mxu1  ;;  %v2276_v42 = vld [vmem:[%s2778_s14 + $0xf0] sm:$0xff] }
 0x24c   : > { %v2290_v56 = vadd.f32 %v2258_v44, %v2168_v16  ;;  %v2171_v47 = vadd.f32 %v3654_v24, %v2170_v40  ;;  %v2274_v16 = vld [vmem:[%s2778_s14 + $0xe0] sm:$0xff] }
 0x24d   : > { %2324 = vst [vmem:[%s3664_s23 + $0x70] sm:$0xff] %v2292_v31  ;;  %v2293_v49 = vadd.f32 %v2261_v50, %v2179_v0  ;;  %v2277_v31 = vld [vmem:[%s2778_s14 + $0xf8] sm:$0xff] }
 0x24e   : > { %2322 = vst [vmem:[%s3664_s23 + $0x60] sm:$0xff] %v2290_v56  ;;  %v2291_v13 = vadd.f32 %v2259_v63, %v2171_v47  ;;  %v2275_v56 = vld [vmem:[%s2778_s14 + $0xe8] sm:$0xff] }
 0x24f   : > { %2325 = vst [vmem:[%s3664_s23 + $0x78] sm:$0xff] %v2293_v49 }
 0x250   : > { %2323 = vst [vmem:[%s3664_s23 + $0x68] sm:$0xff] %v2291_v13 }
 0x25d   : > { %v2621_v58 = vpop.f32.mrb[16].mxu1 }
 0x25e   : > { %v2192_v34 = vadd.f32 %v2621_v58, %v3654_v24  ;;  %v2183_v60 = vpop.f32.mrb[17].mxu1 }
 0x25f   : > { %v2184_v1 = vadd.f32 %v3654_v24, %v2183_v60  ;;  %v2622_v37 = vpop.f32.mrb[18].mxu1 }
 0x260   : > { %v2296_v35 = vadd.f32 %v2264_v52, %v2192_v34  ;;  %v2195_v6 = vadd.f32 %v2622_v37, %v3654_v24  ;;  %v2186_v45 = vpop.f32.mrb[19].mxu1 }
 0x261   : > { %v2294_v25 = vadd.f32 %v2262_v27, %v2184_v1  ;;  %v2187_v26 = vadd.f32 %v3654_v24, %v2186_v45 }
 0x262   : > { %2328 = vst [vmem:[%s3664_s23 + $0x90] sm:$0xff] %v2296_v35  ;;  %v2297_v41 = vadd.f32 %v2265_v2, %v2195_v6 }
 0x263   : > { %2326 = vst [vmem:[%s3664_s23 + $0x80] sm:$0xff] %v2294_v25  ;;  %v2295_v4 = vadd.f32 %v2263_v51, %v2187_v26 }
 0x264   : > { %2329 = vst [vmem:[%s3664_s23 + $0x98] sm:$0xff] %v2297_v41 }
 0x265   : > { %2327 = vst [vmem:[%s3664_s23 + $0x88] sm:$0xff] %v2295_v4 }
 0x272   : > { %v2625_v12 = vpop.f32.mrb[20].mxu1 }
 0x273   : > { %v2208_v22 = vadd.f32 %v2625_v12, %v3654_v24  ;;  %v2199_v11 = vpop.f32.mrb[21].mxu1 }
 0x274   : > { %v2200_v21 = vadd.f32 %v3654_v24, %v2199_v11  ;;  %v2626_v29 = vpop.f32.mrb[22].mxu1 }
 0x275   : > { %v2300_v38 = vadd.f32 %v2268_v32, %v2208_v22  ;;  %v2211_v3 = vadd.f32 %v2626_v29, %v3654_v24  ;;  %v2202_v46 = vpop.f32.mrb[23].mxu1 }
 0x276   : > { %v2298_v62 = vadd.f32 %v2266_v9, %v2200_v21  ;;  %v2203_v54 = vadd.f32 %v3654_v24, %v2202_v46 }
 0x277   : > { %2332 = vst [vmem:[%s3664_s23 + $0xb0] sm:$0xff] %v2300_v38  ;;  %v2301_v28 = vadd.f32 %v2269_v36, %v2211_v3 }
 0x278   : > { %2330 = vst [vmem:[%s3664_s23 + $0xa0] sm:$0xff] %v2298_v62  ;;  %v2299_v57 = vadd.f32 %v2267_v19, %v2203_v54 }
 0x279   : > { %2333 = vst [vmem:[%s3664_s23 + $0xb8] sm:$0xff] %v2301_v28 }
 0x27a   : > { %2331 = vst [vmem:[%s3664_s23 + $0xa8] sm:$0xff] %v2299_v57 }
 0x286   : > { %v2629_v43 = vpop.f32.mrb[24].mxu1 }
 0x287   : > { %v2224_v14 = vadd.f32 %v2629_v43, %v3654_v24  ;;  %v2215_v53 = vpop.f32.mrb[25].mxu1 }
 0x288   : > { %v2216_v33 = vadd.f32 %v3654_v24, %v2215_v53  ;;  %v2630_v39 = vpop.f32.mrb[26].mxu1 }
 0x289   : > { %v2304_v5 = vadd.f32 %v2272_v15, %v2224_v14  ;;  %v2227_v30 = vadd.f32 %v2630_v39, %v3654_v24  ;;  %v2218_v55 = vpop.f32.mrb[27].mxu1 }
 0x28a   : > { %v2302_v10 = vadd.f32 %v2270_v17, %v2216_v33  ;;  %v2219_v7 = vadd.f32 %v3654_v24, %v2218_v55 }
 0x28b   : > { %2336 = vst [vmem:[%s3664_s23 + $0xd0] sm:$0xff] %v2304_v5  ;;  %v2305_v61 = vadd.f32 %v2273_v20, %v2227_v30 }
 0x28c   : > { %2334 = vst [vmem:[%s3664_s23 + $0xc0] sm:$0xff] %v2302_v10  ;;  %v2303_v59 = vadd.f32 %v2271_v18, %v2219_v7 }
 0x28d   : > { %2337 = vst [vmem:[%s3664_s23 + $0xd8] sm:$0xff] %v2305_v61 }
 0x28e   : > { %2335 = vst [vmem:[%s3664_s23 + $0xc8] sm:$0xff] %v2303_v59 }
 0x29b   : > { %v2633_v23 = vpop.f32.mrb[28].mxu1 }
 0x29c   : > { %v2240_v48 = vadd.f32 %v2633_v23, %v3654_v24  ;;  %v2231_v44 = vpop.f32.mrb[29].mxu1 }
 0x29d   : > { %v2232_v8 = vadd.f32 %v3654_v24, %v2231_v44  ;;  %v2634_v50 = vpop.f32.mrb[30].mxu1 }
 0x29e   : > { %v2308_v0 = vadd.f32 %v2276_v42, %v2240_v48  ;;  %v2243_v40 = vadd.f32 %v2634_v50, %v3654_v24  ;;  %v2234_v63 = vpop.f32.mrb[31].mxu1 }
 0x29f   : > { %v2306_v47 = vadd.f32 %v2274_v16, %v2232_v8  ;;  %v2235_v49 = vadd.f32 %v3654_v24, %v2234_v63 }
 0x2a0   : > { %2340 = vst [vmem:[%s3664_s23 + $0xf0] sm:$0xff] %v2308_v0  ;;  %v2309_v13 = vadd.f32 %v2277_v31, %v2243_v40 }
 0x2a1   : > { %2338 = vst [vmem:[%s3664_s23 + $0xe0] sm:$0xff] %v2306_v47  ;;  %v2307_v58 = vadd.f32 %v2275_v56, %v2235_v49 }
 0x2a2   : > { %2341 = vst [vmem:[%s3664_s23 + $0xf8] sm:$0xff] %v2309_v13 }
 0x2a3   : > { %2339 = vst [vmem:[%s3664_s23 + $0xe8] sm:$0xff] %v2307_v58 }
 0x2a4 PF: > { %s17_s26 = sadd.s32 1, %s2700_s26   ;;  %s3776_s24 = smov %s2696_s25 }
 0x2a5   : > { %p14_p5 = scmp.ge.s32.totalorder %s17_s26, 4   ;;  %s3777_s25 = smov %s3779_s27 }
 0x2a7   :  { %16 = sbr.rel (!%p14_p5) target bundleno = 2 (0x2), region = 101 }

</bundles_post_ra>
